<compile_context>
chip_gen: v5e
topology: v5e:2x2
jax: 0.10.0
libtpu: 0.0.40
codegen_flags: <defaults>
</compile_context>

<pallas_src>
import jax
import jax.numpy as jnp
from jax.experimental import pallas as pl
from jax.experimental.pallas import tpu as pltpu


def _make_kernel(L, Co, n_pool, pool_size, tile_n, c_pad, vocab):
    """Builds the per-grid-step kernel for a (tile_n, L) block of token ids."""

    def kernel(tok_ref,            # (N_pad*L,) int32 in SMEM (scalar prefetch)
               w1_hbm,             # (D, Co) f32 (bias folded), left in HBM
               w2r_ref,            # (n_pool, Co, c_pad) bf16, resident in VMEM
               b2_ref,             # (1, c_pad) f32, resident in VMEM
               o_ref,              # (tile_n, c_pad) f32 output block
               h_buf,              # (2, tile_n, L, Co) f32 gather scratch
               sems):              # (2,) DMA semaphores, one per buffer slot
        step = pl.program_id(0)
        n_steps = pl.num_programs(0)
        slot = step & 1

        def row_copy(block, b, l, buf_slot):
            # One gathered row of W1' (one-hot matmul == row gather).
            tok = tok_ref[(block * tile_n + b) * L + l]
            tok = jnp.minimum(jnp.maximum(tok, 0), vocab - 1)   # bounds clamp
            return pltpu.make_async_copy(w1_hbm.at[tok],
                                         h_buf.at[buf_slot, b, l],
                                         sems.at[buf_slot])

        def issue_block(block, buf_slot):
            @pl.loop(0, tile_n)
            def _(b):
                @pl.loop(0, L)
                def _(l):
                    row_copy(block, b, l, buf_slot).start()

        # Prime the pipeline on the first grid step.
        @pl.when(step == 0)
        def _():
            issue_block(0, 0)

        # Cross-step prefetch: start the next block's gather into the other
        # slot before waiting on (or touching) this block's rows.
        @pl.when(step + 1 < n_steps)
        def _():
            issue_block(step + 1, 1 - slot)

        # Wait for this block's rows: counted waits on the slot's single DMA
        # semaphore, built with the same src/dst slices that were issued.
        @pl.loop(0, tile_n)
        def _(b):
            @pl.loop(0, L)
            def _(l):
                row_copy(step, b, l, slot).wait()

        # conv(K=1, full-width) + folded bias + ReLU.
        h = jnp.maximum(h_buf[slot], 0.0)                       # (tile_n, L, Co)

        # avg_pool1d over L into n_pool buckets + per-sample squared norm.
        inv_ps = 1.0 / float(pool_size)
        pooled = []
        sq = None
        for p in range(n_pool):
            win = h[:, p * pool_size:(p + 1) * pool_size, :]    # (tile_n, ps, Co)
            pp = jnp.sum(win, axis=1) * inv_ps                  # (tile_n, Co)
            s = jnp.sum(pp * pp, axis=1, keepdims=True)         # (tile_n, 1)
            sq = s if sq is None else sq + s
            pooled.append(pp.astype(jnp.bfloat16))

        # x /= sqrt(1 + sum(x^2)); the scaling commutes with the linear fc1,
        # so apply it once to the accumulated logits.
        scale = jax.lax.rsqrt(1.0 + sq)                         # (tile_n, 1)

        # fc1: unrolled over n_pool -> bf16 MXU matmuls, f32 accumulation.
        acc = jnp.zeros((tile_n, c_pad), jnp.float32)
        for p in range(n_pool):
            acc = acc + jnp.dot(pooled[p], w2r_ref[p],
                                preferred_element_type=jnp.float32)
        o_ref[...] = acc * scale + b2_ref[...]

    return kernel


def ohcnn_forward(tokens, w1, b1, w2, b2, *, n_pool, tile_n=128):
    """tokens: (N, L) int; w1: (D, Co); b1: (Co,); w2: (C, Co*n_pool); b2: (C,)."""
    N, L = tokens.shape
    D, Co = w1.shape
    C = w2.shape[0]
    assert L % n_pool == 0, "sequence length must be divisible by n_pool"
    pool_size = L // n_pool

    # Batch blocking: tile_n samples per grid step (multiple of 8 sublanes).
    tile_n = max(8, min(tile_n, (N + 7) // 8 * 8))
    tile_n = (tile_n + 7) // 8 * 8
    n_pad = (N + tile_n - 1) // tile_n * tile_n
    n_steps = n_pad // tile_n

    # Lane-dense output: pad the class dim to a multiple of 128.
    c_pad = (C + 127) // 128 * 128

    # Fold b1 into W1 (the gather selects whole rows, so the bias pre-adds).
    w1p = (w1 + b1[None, :]).astype(jnp.float32)                # (D, Co), stays in HBM

    # fc1 weight re-ordered to (n_pool, Co, C): torch flattens (N, Co, n_pool)
    # row-major, i.e. feature index = co * n_pool + p.
    w2r = jnp.transpose(w2.reshape(C, Co, n_pool), (2, 1, 0))   # (n_pool, Co, C)
    if c_pad != C:
        w2r = jnp.pad(w2r, ((0, 0), (0, 0), (0, c_pad - C)))
        b2 = jnp.pad(b2, (0, c_pad - C))
    w2r = w2r.astype(jnp.bfloat16)
    b2_2d = b2.reshape(1, c_pad).astype(jnp.float32)

    # Token ids, padded to a whole number of blocks, flattened 1-D for SMEM.
    tok = tokens.astype(jnp.int32)
    if n_pad != N:
        tok = jnp.pad(tok, ((0, n_pad - N), (0, 0)))            # padded rows use id 0
    tok_flat = tok.reshape(n_pad * L)

    # VMEM budget: double-buffered gather scratch + resident w2r/b2 + out blocks.
    vmem_bytes = (2 * tile_n * ((L + 7) // 8 * 8) * Co * 4      # gather scratch (2 slots)
                  + 2 * n_pool * Co * c_pad * 2                 # w2r (bf16, pipelined x2)
                  + 2 * c_pad * 4                               # b2
                  + 2 * tile_n * c_pad * 4                      # output block
                  + (8 << 20))                                  # headroom
    vmem_limit = int(min(max(vmem_bytes, 32 << 20), 96 << 20))

    kernel = _make_kernel(L, Co, n_pool, pool_size, tile_n, c_pad, D)
    out = pl.pallas_call(
        kernel,
        out_shape=jax.ShapeDtypeStruct((n_pad, c_pad), jnp.float32),
        grid_spec=pltpu.PrefetchScalarGridSpec(
            num_scalar_prefetch=1,          # token ids -> SMEM
            grid=(n_steps,),
            in_specs=[
                pl.BlockSpec(memory_space=pl.ANY),                            # W1' in HBM
                pl.BlockSpec((n_pool, Co, c_pad), lambda s, tok: (0, 0, 0)),  # w2r resident
                pl.BlockSpec((1, c_pad), lambda s, tok: (0, 0)),              # b2 resident
            ],
            out_specs=pl.BlockSpec((tile_n, c_pad), lambda s, tok: (s, 0)),
            scratch_shapes=[
                pltpu.VMEM((2, tile_n, L, Co), jnp.float32),   # double-buffered gather
                pltpu.SemaphoreType.DMA((2,)),                 # one DMA sem per slot
            ],
        ),
        compiler_params=pltpu.CompilerParams(
            # "arbitrary": the cross-step prefetch (prime at step 0, fetch
            # step+1 into the other slot) assumes sequential grid order.
            dimension_semantics=("arbitrary",),
            vmem_limit_bytes=vmem_limit,
        ),
    )(tok_flat, w1p, w2r, b2_2d)
    return out[:N, :C]


def ohcnn_reference(x, w1, b1, w2, b2, *, n_pool):
    """Pure-JAX reference mirroring the PyTorch forward exactly (dense one-hot x)."""
    N, L, D = x.shape
    Co = w1.shape[1]
    h = jnp.maximum(jnp.einsum('nld,dk->nlk', x, w1) + b1[None, None, :], 0.0)
    h = jnp.transpose(h, (0, 2, 1))                            # (N, Co, L)
    pooled = h.reshape(N, Co, n_pool, L // n_pool).mean(-1)    # (N, Co, n_pool)
    f = pooled.reshape(N, Co * n_pool)
    f = f / jnp.sqrt(1.0 + jnp.sum(f * f, axis=1, keepdims=True))
    return f @ w2.T + b2[None, :]


if __name__ == "__main__":
    # Small shapes consistent with the module (production: D=30000, Co=1000,
    # n_pool=10, C=n_classes).
    N, L, D, Co, n_pool, C = 2, 20, 256, 128, 10, 16

    key = jax.random.PRNGKey(0)
    k_tok, k_w1, k_b1, k_w2, k_b2 = jax.random.split(key, 5)

    tokens = jax.random.randint(k_tok, (N, L), 0, D)          # one-hot token ids
    w1 = 0.05 * jax.random.normal(k_w1, (D, Co), dtype=jnp.float32)
    b1 = 0.01 * jax.random.normal(k_b1, (Co,), dtype=jnp.float32)
    w2 = 0.05 * jax.random.normal(k_w2, (C, Co * n_pool), dtype=jnp.float32)
    b2 = 0.01 * jax.random.normal(k_b2, (C,), dtype=jnp.float32)

    out = ohcnn_forward(tokens, w1, b1, w2, b2, n_pool=n_pool)
    out = jax.block_until_ready(out)

    x_dense = jax.nn.one_hot(tokens, D, dtype=jnp.float32)
    ref = ohcnn_reference(x_dense, w1, b1, w2, b2, n_pool=n_pool)
    assert out.shape == (N, C)
    # fc1 runs in bf16 (f32 accumulation), so the tolerance is bf16-scale.
    assert jnp.allclose(out, ref, atol=5e-3, rtol=5e-3), (
        float(jnp.max(jnp.abs(out - ref))), out, ref)

    print("KERNEL_OK")
</pallas_src>

<mosaic_0001>
module attributes {stable_mosaic.version = 11 : i64} {
  func.func @kernel(%arg0: i32, %arg1: memref<160xi32, #tpu.memory_space<smem>>, %arg2: memref<256x128xf32, #tpu.memory_space<any>>, %arg3: memref<10x128x128xbf16, #tpu.memory_space<vmem>>, %arg4: memref<1x128xf32, #tpu.memory_space<vmem>>, %arg5: memref<8x128xf32, #tpu.memory_space<vmem>>, %arg6: memref<2x8x20x128xf32, #tpu.memory_space<vmem>>, %arg7: memref<2x!tpu.dma_semaphore, #tpu.memory_space<semaphore_mem>>) attributes {dimension_semantics = [#tpu.dimension_semantics<arbitrary>], iteration_bounds = array<i64: 1>, scalar_prefetch = 1 : i64, scratch_operands = 2 : i64, tpu.core_type = #tpu.core_type<tc>, window_params = [{}, {pipeline_mode = #tpu.pipeline_mode<synchronous>, transform_indices = @transform_1, window_bounds = array<i64: 10, 128, 128>}, {pipeline_mode = #tpu.pipeline_mode<synchronous>, transform_indices = @transform_2, window_bounds = array<i64: 1, 128>}, {transform_indices = @transform_3, window_bounds = array<i64: 8, 128>}]} {
    %c1_i32 = arith.constant 1 : i32
    %0 = arith.andi %arg0, %c1_i32 : i32
    %c0_i32 = arith.constant 0 : i32
    %1 = arith.cmpi eq, %arg0, %c0_i32 : i32
    %2 = arith.extui %1 : i1 to i32
    %c0_i32_0 = arith.constant 0 : i32
    %3 = arith.cmpi ne, %2, %c0_i32_0 : i32
    scf.if %3 {
      %c0_i32_76 = arith.constant 0 : i32
      %c8_i32_77 = arith.constant 8 : i32
      %153 = arith.addi %c0_i32_76, %c8_i32_77 : i32
      %c1_i32_78 = arith.constant 1 : i32
      scf.for %arg8 = %c0_i32_76 to %153 step %c1_i32_78  : i32 {
        %c1_i32_80 = arith.constant 1 : i32
        %154 = arith.muli %arg8, %c1_i32_80 : i32
        %c0_i32_81 = arith.constant 0 : i32
        %155 = arith.addi %c0_i32_81, %154 : i32
        %c0_i32_82 = arith.constant 0 : i32
        %c20_i32 = arith.constant 20 : i32
        %156 = arith.addi %c0_i32_82, %c20_i32 : i32
        %c1_i32_83 = arith.constant 1 : i32
        scf.for %arg9 = %c0_i32_82 to %156 step %c1_i32_83  : i32 {
          %c1_i32_85 = arith.constant 1 : i32
          %157 = arith.muli %arg9, %c1_i32_85 : i32
          %c0_i32_86 = arith.constant 0 : i32
          %158 = arith.addi %c0_i32_86, %157 : i32
          %c0_i32_87 = arith.constant 0 : i32
          %159 = arith.addi %c0_i32_87, %155 : i32
          %c20_i32_88 = arith.constant 20 : i32
          %160 = arith.muli %159, %c20_i32_88 : i32
          %161 = arith.addi %160, %158 : i32
          %162 = arith.index_cast %161 : i32 to index
          %163 = memref.load %arg1[%162] : memref<160xi32, #tpu.memory_space<smem>>
          %c0_i32_89 = arith.constant 0 : i32
          %164 = arith.maxsi %163, %c0_i32_89 : i32
          %c255_i32 = arith.constant 255 : i32
          %165 = arith.minsi %164, %c255_i32 : i32
          %c0_i32_90 = arith.constant 0 : i32
          %c0_i32_91 = arith.constant 0 : i32
          %c0_i32_92 = arith.constant 0 : i32
          %166 = tpu.memref_slice %arg2[%165, %c0_i32_92] : memref<256x128xf32, #tpu.memory_space<any>> -> memref<1x128xf32, #tpu.memory_space<any>>
          %167 = tpu.memref_squeeze %166 : memref<1x128xf32, #tpu.memory_space<any>> -> memref<128xf32, #tpu.memory_space<any>>
          %c0_i32_93 = arith.constant 0 : i32
          %168 = tpu.memref_slice %arg6[%c0_i32_90, %155, %158, %c0_i32_93] : memref<2x8x20x128xf32, #tpu.memory_space<vmem>> -> memref<1x1x1x128xf32, #tpu.memory_space<vmem>>
          %169 = tpu.memref_squeeze %168 : memref<1x1x1x128xf32, #tpu.memory_space<vmem>> -> memref<128xf32, #tpu.memory_space<vmem>>
          %170 = tpu.memref_slice %arg7[%c0_i32_91] : memref<2x!tpu.dma_semaphore, #tpu.memory_space<semaphore_mem>> -> memref<1x!tpu.dma_semaphore, #tpu.memory_space<semaphore_mem>>
          %171 = tpu.memref_squeeze %170 : memref<1x!tpu.dma_semaphore, #tpu.memory_space<semaphore_mem>> -> memref<!tpu.dma_semaphore, #tpu.memory_space<semaphore_mem>>
          tpu.enqueue_dma source(%167 : memref<128xf32, #tpu.memory_space<any>>) target(%169 : memref<128xf32, #tpu.memory_space<vmem>>) target_semaphore(%171 : memref<!tpu.dma_semaphore, #tpu.memory_space<semaphore_mem>>)
        }
        %c20_i32_84 = arith.constant 20 : i32
      }
      %c8_i32_79 = arith.constant 8 : i32
    } else {
    }
    %c1_i32_1 = arith.constant 1 : i32
    %4 = arith.addi %arg0, %c1_i32_1 : i32
    %c1_i32_2 = arith.constant 1 : i32
    %5 = arith.cmpi slt, %4, %c1_i32_2 : i32
    %6 = arith.extui %5 : i1 to i32
    %c0_i32_3 = arith.constant 0 : i32
    %7 = arith.cmpi ne, %6, %c0_i32_3 : i32
    scf.if %7 {
      %c1_i32_76 = arith.constant 1 : i32
      %153 = arith.addi %arg0, %c1_i32_76 : i32
      %c1_i32_77 = arith.constant 1 : i32
      %154 = arith.subi %c1_i32_77, %0 : i32
      %c0_i32_78 = arith.constant 0 : i32
      %c8_i32_79 = arith.constant 8 : i32
      %155 = arith.addi %c0_i32_78, %c8_i32_79 : i32
      %c1_i32_80 = arith.constant 1 : i32
      scf.for %arg8 = %c0_i32_78 to %155 step %c1_i32_80  : i32 {
        %c1_i32_82 = arith.constant 1 : i32
        %156 = arith.muli %arg8, %c1_i32_82 : i32
        %c0_i32_83 = arith.constant 0 : i32
        %157 = arith.addi %c0_i32_83, %156 : i32
        %c0_i32_84 = arith.constant 0 : i32
        %c20_i32 = arith.constant 20 : i32
        %158 = arith.addi %c0_i32_84, %c20_i32 : i32
        %c1_i32_85 = arith.constant 1 : i32
        scf.for %arg9 = %c0_i32_84 to %158 step %c1_i32_85  : i32 {
          %c1_i32_87 = arith.constant 1 : i32
          %159 = arith.muli %arg9, %c1_i32_87 : i32
          %c0_i32_88 = arith.constant 0 : i32
          %160 = arith.addi %c0_i32_88, %159 : i32
          %c8_i32_89 = arith.constant 8 : i32
          %161 = arith.muli %153, %c8_i32_89 : i32
          %162 = arith.addi %161, %157 : i32
          %c20_i32_90 = arith.constant 20 : i32
          %163 = arith.muli %162, %c20_i32_90 : i32
          %164 = arith.addi %163, %160 : i32
          %165 = arith.index_cast %164 : i32 to index
          %166 = memref.load %arg1[%165] : memref<160xi32, #tpu.memory_space<smem>>
          %c0_i32_91 = arith.constant 0 : i32
          %167 = arith.maxsi %166, %c0_i32_91 : i32
          %c255_i32 = arith.constant 255 : i32
          %168 = arith.minsi %167, %c255_i32 : i32
          %c0_i32_92 = arith.constant 0 : i32
          %169 = tpu.memref_slice %arg2[%168, %c0_i32_92] : memref<256x128xf32, #tpu.memory_space<any>> -> memref<1x128xf32, #tpu.memory_space<any>>
          %170 = tpu.memref_squeeze %169 : memref<1x128xf32, #tpu.memory_space<any>> -> memref<128xf32, #tpu.memory_space<any>>
          %c0_i32_93 = arith.constant 0 : i32
          %171 = tpu.memref_slice %arg6[%154, %157, %160, %c0_i32_93] : memref<2x8x20x128xf32, #tpu.memory_space<vmem>> -> memref<1x1x1x128xf32, #tpu.memory_space<vmem>>
          %172 = tpu.memref_squeeze %171 : memref<1x1x1x128xf32, #tpu.memory_space<vmem>> -> memref<128xf32, #tpu.memory_space<vmem>>
          %173 = tpu.memref_slice %arg7[%154] : memref<2x!tpu.dma_semaphore, #tpu.memory_space<semaphore_mem>> -> memref<1x!tpu.dma_semaphore, #tpu.memory_space<semaphore_mem>>
          %174 = tpu.memref_squeeze %173 : memref<1x!tpu.dma_semaphore, #tpu.memory_space<semaphore_mem>> -> memref<!tpu.dma_semaphore, #tpu.memory_space<semaphore_mem>>
          tpu.enqueue_dma source(%170 : memref<128xf32, #tpu.memory_space<any>>) target(%172 : memref<128xf32, #tpu.memory_space<vmem>>) target_semaphore(%174 : memref<!tpu.dma_semaphore, #tpu.memory_space<semaphore_mem>>)
        }
        %c20_i32_86 = arith.constant 20 : i32
      }
      %c8_i32_81 = arith.constant 8 : i32
    } else {
    }
    %c0_i32_4 = arith.constant 0 : i32
    %c8_i32 = arith.constant 8 : i32
    %8 = arith.addi %c0_i32_4, %c8_i32 : i32
    %c1_i32_5 = arith.constant 1 : i32
    scf.for %arg8 = %c0_i32_4 to %8 step %c1_i32_5  : i32 {
      %c1_i32_76 = arith.constant 1 : i32
      %153 = arith.muli %arg8, %c1_i32_76 : i32
      %c0_i32_77 = arith.constant 0 : i32
      %154 = arith.addi %c0_i32_77, %153 : i32
      %c0_i32_78 = arith.constant 0 : i32
      %c20_i32 = arith.constant 20 : i32
      %155 = arith.addi %c0_i32_78, %c20_i32 : i32
      %c1_i32_79 = arith.constant 1 : i32
      scf.for %arg9 = %c0_i32_78 to %155 step %c1_i32_79  : i32 {
        %c1_i32_81 = arith.constant 1 : i32
        %156 = arith.muli %arg9, %c1_i32_81 : i32
        %c0_i32_82 = arith.constant 0 : i32
        %157 = arith.addi %c0_i32_82, %156 : i32
        %c8_i32_83 = arith.constant 8 : i32
        %158 = arith.muli %arg0, %c8_i32_83 : i32
        %159 = arith.addi %158, %154 : i32
        %c20_i32_84 = arith.constant 20 : i32
        %160 = arith.muli %159, %c20_i32_84 : i32
        %161 = arith.addi %160, %157 : i32
        %162 = arith.index_cast %161 : i32 to index
        %163 = memref.load %arg1[%162] : memref<160xi32, #tpu.memory_space<smem>>
        %c0_i32_85 = arith.constant 0 : i32
        %164 = arith.maxsi %163, %c0_i32_85 : i32
        %c255_i32 = arith.constant 255 : i32
        %165 = arith.minsi %164, %c255_i32 : i32
        %c0_i32_86 = arith.constant 0 : i32
        %166 = tpu.memref_slice %arg2[%165, %c0_i32_86] : memref<256x128xf32, #tpu.memory_space<any>> -> memref<1x128xf32, #tpu.memory_space<any>>
        %167 = tpu.memref_squeeze %166 : memref<1x128xf32, #tpu.memory_space<any>> -> memref<128xf32, #tpu.memory_space<any>>
        %c0_i32_87 = arith.constant 0 : i32
        %168 = tpu.memref_slice %arg6[%0, %154, %157, %c0_i32_87] : memref<2x8x20x128xf32, #tpu.memory_space<vmem>> -> memref<1x1x1x128xf32, #tpu.memory_space<vmem>>
        %169 = tpu.memref_squeeze %168 : memref<1x1x1x128xf32, #tpu.memory_space<vmem>> -> memref<128xf32, #tpu.memory_space<vmem>>
        %170 = tpu.memref_slice %arg7[%0] : memref<2x!tpu.dma_semaphore, #tpu.memory_space<semaphore_mem>> -> memref<1x!tpu.dma_semaphore, #tpu.memory_space<semaphore_mem>>
        %171 = tpu.memref_squeeze %170 : memref<1x!tpu.dma_semaphore, #tpu.memory_space<semaphore_mem>> -> memref<!tpu.dma_semaphore, #tpu.memory_space<semaphore_mem>>
        tpu.wait_dma2 semaphore(%171 : memref<!tpu.dma_semaphore, #tpu.memory_space<semaphore_mem>>) src(%167 : memref<128xf32, #tpu.memory_space<any>>) dst(%169 : memref<128xf32, #tpu.memory_space<vmem>>)
      }
      %c20_i32_80 = arith.constant 20 : i32
    }
    %c8_i32_6 = arith.constant 8 : i32
    %9 = arith.index_cast %0 : i32 to index
    %c0 = arith.constant 0 : index
    %c0_7 = arith.constant 0 : index
    %c0_8 = arith.constant 0 : index
    %10 = vector.load %arg6[%9, %c0, %c0_7, %c0_8] : memref<2x8x20x128xf32, #tpu.memory_space<vmem>>, vector<1x8x20x128xf32>
    %11 = vector.shape_cast %10 : vector<1x8x20x128xf32> to vector<8x20x128xf32>
    %cst = arith.constant 0.000000e+00 : f32
    %12 = vector.broadcast %cst : f32 to vector<8x20x128xf32>
    %13 = arith.maximumf %11, %12 : vector<8x20x128xf32>
    %14 = vector.extract_strided_slice %13 {offsets = [0, 0, 0], sizes = [8, 2, 128], strides = [1, 1, 1]} : vector<8x20x128xf32> to vector<8x2x128xf32>
    %cst_9 = arith.constant dense<0.000000e+00> : vector<8x128xf32>
    %15 = vector.multi_reduction <add>, %14, %cst_9 [1] : vector<8x2x128xf32> to vector<8x128xf32>
    %cst_10 = arith.constant 5.000000e-01 : f32
    %16 = vector.broadcast %cst_10 : f32 to vector<8x128xf32>
    %17 = arith.mulf %15, %16 : vector<8x128xf32>
    %18 = arith.mulf %17, %17 : vector<8x128xf32>
    %cst_11 = arith.constant dense<0.000000e+00> : vector<8xf32>
    %19 = vector.multi_reduction <add>, %18, %cst_11 [1] : vector<8x128xf32> to vector<8xf32>
    %20 = vector.shape_cast %19 : vector<8xf32> to vector<8x1xf32>
    %21 = arith.truncf %17 : vector<8x128xf32> to vector<8x128xbf16>
    %22 = vector.extract_strided_slice %13 {offsets = [0, 2, 0], sizes = [8, 2, 128], strides = [1, 1, 1]} : vector<8x20x128xf32> to vector<8x2x128xf32>
    %cst_12 = arith.constant dense<0.000000e+00> : vector<8x128xf32>
    %23 = vector.multi_reduction <add>, %22, %cst_12 [1] : vector<8x2x128xf32> to vector<8x128xf32>
    %cst_13 = arith.constant 5.000000e-01 : f32
    %24 = vector.broadcast %cst_13 : f32 to vector<8x128xf32>
    %25 = arith.mulf %23, %24 : vector<8x128xf32>
    %26 = arith.mulf %25, %25 : vector<8x128xf32>
    %cst_14 = arith.constant dense<0.000000e+00> : vector<8xf32>
    %27 = vector.multi_reduction <add>, %26, %cst_14 [1] : vector<8x128xf32> to vector<8xf32>
    %28 = vector.shape_cast %27 : vector<8xf32> to vector<8x1xf32>
    %29 = arith.addf %20, %28 : vector<8x1xf32>
    %30 = arith.truncf %25 : vector<8x128xf32> to vector<8x128xbf16>
    %31 = vector.extract_strided_slice %13 {offsets = [0, 4, 0], sizes = [8, 2, 128], strides = [1, 1, 1]} : vector<8x20x128xf32> to vector<8x2x128xf32>
    %cst_15 = arith.constant dense<0.000000e+00> : vector<8x128xf32>
    %32 = vector.multi_reduction <add>, %31, %cst_15 [1] : vector<8x2x128xf32> to vector<8x128xf32>
    %cst_16 = arith.constant 5.000000e-01 : f32
    %33 = vector.broadcast %cst_16 : f32 to vector<8x128xf32>
    %34 = arith.mulf %32, %33 : vector<8x128xf32>
    %35 = arith.mulf %34, %34 : vector<8x128xf32>
    %cst_17 = arith.constant dense<0.000000e+00> : vector<8xf32>
    %36 = vector.multi_reduction <add>, %35, %cst_17 [1] : vector<8x128xf32> to vector<8xf32>
    %37 = vector.shape_cast %36 : vector<8xf32> to vector<8x1xf32>
    %38 = arith.addf %29, %37 : vector<8x1xf32>
    %39 = arith.truncf %34 : vector<8x128xf32> to vector<8x128xbf16>
    %40 = vector.extract_strided_slice %13 {offsets = [0, 6, 0], sizes = [8, 2, 128], strides = [1, 1, 1]} : vector<8x20x128xf32> to vector<8x2x128xf32>
    %cst_18 = arith.constant dense<0.000000e+00> : vector<8x128xf32>
    %41 = vector.multi_reduction <add>, %40, %cst_18 [1] : vector<8x2x128xf32> to vector<8x128xf32>
    %cst_19 = arith.constant 5.000000e-01 : f32
    %42 = vector.broadcast %cst_19 : f32 to vector<8x128xf32>
    %43 = arith.mulf %41, %42 : vector<8x128xf32>
    %44 = arith.mulf %43, %43 : vector<8x128xf32>
    %cst_20 = arith.constant dense<0.000000e+00> : vector<8xf32>
    %45 = vector.multi_reduction <add>, %44, %cst_20 [1] : vector<8x128xf32> to vector<8xf32>
    %46 = vector.shape_cast %45 : vector<8xf32> to vector<8x1xf32>
    %47 = arith.addf %38, %46 : vector<8x1xf32>
    %48 = arith.truncf %43 : vector<8x128xf32> to vector<8x128xbf16>
    %49 = vector.extract_strided_slice %13 {offsets = [0, 8, 0], sizes = [8, 2, 128], strides = [1, 1, 1]} : vector<8x20x128xf32> to vector<8x2x128xf32>
    %cst_21 = arith.constant dense<0.000000e+00> : vector<8x128xf32>
    %50 = vector.multi_reduction <add>, %49, %cst_21 [1] : vector<8x2x128xf32> to vector<8x128xf32>
    %cst_22 = arith.constant 5.000000e-01 : f32
    %51 = vector.broadcast %cst_22 : f32 to vector<8x128xf32>
    %52 = arith.mulf %50, %51 : vector<8x128xf32>
    %53 = arith.mulf %52, %52 : vector<8x128xf32>
    %cst_23 = arith.constant dense<0.000000e+00> : vector<8xf32>
    %54 = vector.multi_reduction <add>, %53, %cst_23 [1] : vector<8x128xf32> to vector<8xf32>
    %55 = vector.shape_cast %54 : vector<8xf32> to vector<8x1xf32>
    %56 = arith.addf %47, %55 : vector<8x1xf32>
    %57 = arith.truncf %52 : vector<8x128xf32> to vector<8x128xbf16>
    %58 = vector.extract_strided_slice %13 {offsets = [0, 10, 0], sizes = [8, 2, 128], strides = [1, 1, 1]} : vector<8x20x128xf32> to vector<8x2x128xf32>
    %cst_24 = arith.constant dense<0.000000e+00> : vector<8x128xf32>
    %59 = vector.multi_reduction <add>, %58, %cst_24 [1] : vector<8x2x128xf32> to vector<8x128xf32>
    %cst_25 = arith.constant 5.000000e-01 : f32
    %60 = vector.broadcast %cst_25 : f32 to vector<8x128xf32>
    %61 = arith.mulf %59, %60 : vector<8x128xf32>
    %62 = arith.mulf %61, %61 : vector<8x128xf32>
    %cst_26 = arith.constant dense<0.000000e+00> : vector<8xf32>
    %63 = vector.multi_reduction <add>, %62, %cst_26 [1] : vector<8x128xf32> to vector<8xf32>
    %64 = vector.shape_cast %63 : vector<8xf32> to vector<8x1xf32>
    %65 = arith.addf %56, %64 : vector<8x1xf32>
    %66 = arith.truncf %61 : vector<8x128xf32> to vector<8x128xbf16>
    %67 = vector.extract_strided_slice %13 {offsets = [0, 12, 0], sizes = [8, 2, 128], strides = [1, 1, 1]} : vector<8x20x128xf32> to vector<8x2x128xf32>
    %cst_27 = arith.constant dense<0.000000e+00> : vector<8x128xf32>
    %68 = vector.multi_reduction <add>, %67, %cst_27 [1] : vector<8x2x128xf32> to vector<8x128xf32>
    %cst_28 = arith.constant 5.000000e-01 : f32
    %69 = vector.broadcast %cst_28 : f32 to vector<8x128xf32>
    %70 = arith.mulf %68, %69 : vector<8x128xf32>
    %71 = arith.mulf %70, %70 : vector<8x128xf32>
    %cst_29 = arith.constant dense<0.000000e+00> : vector<8xf32>
    %72 = vector.multi_reduction <add>, %71, %cst_29 [1] : vector<8x128xf32> to vector<8xf32>
    %73 = vector.shape_cast %72 : vector<8xf32> to vector<8x1xf32>
    %74 = arith.addf %65, %73 : vector<8x1xf32>
    %75 = arith.truncf %70 : vector<8x128xf32> to vector<8x128xbf16>
    %76 = vector.extract_strided_slice %13 {offsets = [0, 14, 0], sizes = [8, 2, 128], strides = [1, 1, 1]} : vector<8x20x128xf32> to vector<8x2x128xf32>
    %cst_30 = arith.constant dense<0.000000e+00> : vector<8x128xf32>
    %77 = vector.multi_reduction <add>, %76, %cst_30 [1] : vector<8x2x128xf32> to vector<8x128xf32>
    %cst_31 = arith.constant 5.000000e-01 : f32
    %78 = vector.broadcast %cst_31 : f32 to vector<8x128xf32>
    %79 = arith.mulf %77, %78 : vector<8x128xf32>
    %80 = arith.mulf %79, %79 : vector<8x128xf32>
    %cst_32 = arith.constant dense<0.000000e+00> : vector<8xf32>
    %81 = vector.multi_reduction <add>, %80, %cst_32 [1] : vector<8x128xf32> to vector<8xf32>
    %82 = vector.shape_cast %81 : vector<8xf32> to vector<8x1xf32>
    %83 = arith.addf %74, %82 : vector<8x1xf32>
    %84 = arith.truncf %79 : vector<8x128xf32> to vector<8x128xbf16>
    %85 = vector.extract_strided_slice %13 {offsets = [0, 16, 0], sizes = [8, 2, 128], strides = [1, 1, 1]} : vector<8x20x128xf32> to vector<8x2x128xf32>
    %cst_33 = arith.constant dense<0.000000e+00> : vector<8x128xf32>
    %86 = vector.multi_reduction <add>, %85, %cst_33 [1] : vector<8x2x128xf32> to vector<8x128xf32>
    %cst_34 = arith.constant 5.000000e-01 : f32
    %87 = vector.broadcast %cst_34 : f32 to vector<8x128xf32>
    %88 = arith.mulf %86, %87 : vector<8x128xf32>
    %89 = arith.mulf %88, %88 : vector<8x128xf32>
    %cst_35 = arith.constant dense<0.000000e+00> : vector<8xf32>
    %90 = vector.multi_reduction <add>, %89, %cst_35 [1] : vector<8x128xf32> to vector<8xf32>
    %91 = vector.shape_cast %90 : vector<8xf32> to vector<8x1xf32>
    %92 = arith.addf %83, %91 : vector<8x1xf32>
    %93 = arith.truncf %88 : vector<8x128xf32> to vector<8x128xbf16>
    %94 = vector.extract_strided_slice %13 {offsets = [0, 18, 0], sizes = [8, 2, 128], strides = [1, 1, 1]} : vector<8x20x128xf32> to vector<8x2x128xf32>
    %cst_36 = arith.constant dense<0.000000e+00> : vector<8x128xf32>
    %95 = vector.multi_reduction <add>, %94, %cst_36 [1] : vector<8x2x128xf32> to vector<8x128xf32>
    %cst_37 = arith.constant 5.000000e-01 : f32
    %96 = vector.broadcast %cst_37 : f32 to vector<8x128xf32>
    %97 = arith.mulf %95, %96 : vector<8x128xf32>
    %98 = arith.mulf %97, %97 : vector<8x128xf32>
    %cst_38 = arith.constant dense<0.000000e+00> : vector<8xf32>
    %99 = vector.multi_reduction <add>, %98, %cst_38 [1] : vector<8x128xf32> to vector<8xf32>
    %100 = vector.shape_cast %99 : vector<8xf32> to vector<8x1xf32>
    %101 = arith.addf %92, %100 : vector<8x1xf32>
    %102 = arith.truncf %97 : vector<8x128xf32> to vector<8x128xbf16>
    %cst_39 = arith.constant 1.000000e+00 : f32
    %103 = vector.broadcast %cst_39 : f32 to vector<8x1xf32>
    %104 = arith.addf %103, %101 : vector<8x1xf32>
    %105 = math.rsqrt %104 : vector<8x1xf32>
    %cst_40 = arith.constant 0.000000e+00 : f32
    %106 = vector.broadcast %cst_40 : f32 to vector<8x128xf32>
    %c0_41 = arith.constant 0 : index
    %c0_42 = arith.constant 0 : index
    %c0_43 = arith.constant 0 : index
    %107 = vector.load %arg3[%c0_41, %c0_42, %c0_43] : memref<10x128x128xbf16, #tpu.memory_space<vmem>>, vector<1x128x128xbf16>
    %108 = vector.shape_cast %107 : vector<1x128x128xbf16> to vector<128x128xbf16>
    %cst_44 = arith.constant dense<0.000000e+00> : vector<8x128xf32>
    %109 = tpu.matmul %21, %108, %cst_44 {dimension_numbers = #tpu.dot_dimension_numbers<[1], [0], [0], [1], [0, 0, 1, 1], [], []>} : vector<8x128xbf16>, vector<128x128xbf16>, vector<8x128xf32> -> vector<8x128xf32>
    %110 = arith.addf %106, %109 : vector<8x128xf32>
    %c1 = arith.constant 1 : index
    %c0_45 = arith.constant 0 : index
    %c0_46 = arith.constant 0 : index
    %111 = vector.load %arg3[%c1, %c0_45, %c0_46] : memref<10x128x128xbf16, #tpu.memory_space<vmem>>, vector<1x128x128xbf16>
    %112 = vector.shape_cast %111 : vector<1x128x128xbf16> to vector<128x128xbf16>
    %cst_47 = arith.constant dense<0.000000e+00> : vector<8x128xf32>
    %113 = tpu.matmul %30, %112, %cst_47 {dimension_numbers = #tpu.dot_dimension_numbers<[1], [0], [0], [1], [0, 0, 1, 1], [], []>} : vector<8x128xbf16>, vector<128x128xbf16>, vector<8x128xf32> -> vector<8x128xf32>
    %114 = arith.addf %110, %113 : vector<8x128xf32>
    %c2 = arith.constant 2 : index
    %c0_48 = arith.constant 0 : index
    %c0_49 = arith.constant 0 : index
    %115 = vector.load %arg3[%c2, %c0_48, %c0_49] : memref<10x128x128xbf16, #tpu.memory_space<vmem>>, vector<1x128x128xbf16>
    %116 = vector.shape_cast %115 : vector<1x128x128xbf16> to vector<128x128xbf16>
    %cst_50 = arith.constant dense<0.000000e+00> : vector<8x128xf32>
    %117 = tpu.matmul %39, %116, %cst_50 {dimension_numbers = #tpu.dot_dimension_numbers<[1], [0], [0], [1], [0, 0, 1, 1], [], []>} : vector<8x128xbf16>, vector<128x128xbf16>, vector<8x128xf32> -> vector<8x128xf32>
    %118 = arith.addf %114, %117 : vector<8x128xf32>
    %c3 = arith.constant 3 : index
    %c0_51 = arith.constant 0 : index
    %c0_52 = arith.constant 0 : index
    %119 = vector.load %arg3[%c3, %c0_51, %c0_52] : memref<10x128x128xbf16, #tpu.memory_space<vmem>>, vector<1x128x128xbf16>
    %120 = vector.shape_cast %119 : vector<1x128x128xbf16> to vector<128x128xbf16>
    %cst_53 = arith.constant dense<0.000000e+00> : vector<8x128xf32>
    %121 = tpu.matmul %48, %120, %cst_53 {dimension_numbers = #tpu.dot_dimension_numbers<[1], [0], [0], [1], [0, 0, 1, 1], [], []>} : vector<8x128xbf16>, vector<128x128xbf16>, vector<8x128xf32> -> vector<8x128xf32>
    %122 = arith.addf %118, %121 : vector<8x128xf32>
    %c4 = arith.constant 4 : index
    %c0_54 = arith.constant 0 : index
    %c0_55 = arith.constant 0 : index
    %123 = vector.load %arg3[%c4, %c0_54, %c0_55] : memref<10x128x128xbf16, #tpu.memory_space<vmem>>, vector<1x128x128xbf16>
    %124 = vector.shape_cast %123 : vector<1x128x128xbf16> to vector<128x128xbf16>
    %cst_56 = arith.constant dense<0.000000e+00> : vector<8x128xf32>
    %125 = tpu.matmul %57, %124, %cst_56 {dimension_numbers = #tpu.dot_dimension_numbers<[1], [0], [0], [1], [0, 0, 1, 1], [], []>} : vector<8x128xbf16>, vector<128x128xbf16>, vector<8x128xf32> -> vector<8x128xf32>
    %126 = arith.addf %122, %125 : vector<8x128xf32>
    %c5 = arith.constant 5 : index
    %c0_57 = arith.constant 0 : index
    %c0_58 = arith.constant 0 : index
    %127 = vector.load %arg3[%c5, %c0_57, %c0_58] : memref<10x128x128xbf16, #tpu.memory_space<vmem>>, vector<1x128x128xbf16>
    %128 = vector.shape_cast %127 : vector<1x128x128xbf16> to vector<128x128xbf16>
    %cst_59 = arith.constant dense<0.000000e+00> : vector<8x128xf32>
    %129 = tpu.matmul %66, %128, %cst_59 {dimension_numbers = #tpu.dot_dimension_numbers<[1], [0], [0], [1], [0, 0, 1, 1], [], []>} : vector<8x128xbf16>, vector<128x128xbf16>, vector<8x128xf32> -> vector<8x128xf32>
    %130 = arith.addf %126, %129 : vector<8x128xf32>
    %c6 = arith.constant 6 : index
    %c0_60 = arith.constant 0 : index
    %c0_61 = arith.constant 0 : index
    %131 = vector.load %arg3[%c6, %c0_60, %c0_61] : memref<10x128x128xbf16, #tpu.memory_space<vmem>>, vector<1x128x128xbf16>
    %132 = vector.shape_cast %131 : vector<1x128x128xbf16> to vector<128x128xbf16>
    %cst_62 = arith.constant dense<0.000000e+00> : vector<8x128xf32>
    %133 = tpu.matmul %75, %132, %cst_62 {dimension_numbers = #tpu.dot_dimension_numbers<[1], [0], [0], [1], [0, 0, 1, 1], [], []>} : vector<8x128xbf16>, vector<128x128xbf16>, vector<8x128xf32> -> vector<8x128xf32>
    %134 = arith.addf %130, %133 : vector<8x128xf32>
    %c7 = arith.constant 7 : index
    %c0_63 = arith.constant 0 : index
    %c0_64 = arith.constant 0 : index
    %135 = vector.load %arg3[%c7, %c0_63, %c0_64] : memref<10x128x128xbf16, #tpu.memory_space<vmem>>, vector<1x128x128xbf16>
    %136 = vector.shape_cast %135 : vector<1x128x128xbf16> to vector<128x128xbf16>
    %cst_65 = arith.constant dense<0.000000e+00> : vector<8x128xf32>
    %137 = tpu.matmul %84, %136, %cst_65 {dimension_numbers = #tpu.dot_dimension_numbers<[1], [0], [0], [1], [0, 0, 1, 1], [], []>} : vector<8x128xbf16>, vector<128x128xbf16>, vector<8x128xf32> -> vector<8x128xf32>
    %138 = arith.addf %134, %137 : vector<8x128xf32>
    %c8 = arith.constant 8 : index
    %c0_66 = arith.constant 0 : index
    %c0_67 = arith.constant 0 : index
    %139 = vector.load %arg3[%c8, %c0_66, %c0_67] : memref<10x128x128xbf16, #tpu.memory_space<vmem>>, vector<1x128x128xbf16>
    %140 = vector.shape_cast %139 : vector<1x128x128xbf16> to vector<128x128xbf16>
    %cst_68 = arith.constant dense<0.000000e+00> : vector<8x128xf32>
    %141 = tpu.matmul %93, %140, %cst_68 {dimension_numbers = #tpu.dot_dimension_numbers<[1], [0], [0], [1], [0, 0, 1, 1], [], []>} : vector<8x128xbf16>, vector<128x128xbf16>, vector<8x128xf32> -> vector<8x128xf32>
    %142 = arith.addf %138, %141 : vector<8x128xf32>
    %c9 = arith.constant 9 : index
    %c0_69 = arith.constant 0 : index
    %c0_70 = arith.constant 0 : index
    %143 = vector.load %arg3[%c9, %c0_69, %c0_70] : memref<10x128x128xbf16, #tpu.memory_space<vmem>>, vector<1x128x128xbf16>
    %144 = vector.shape_cast %143 : vector<1x128x128xbf16> to vector<128x128xbf16>
    %cst_71 = arith.constant dense<0.000000e+00> : vector<8x128xf32>
    %145 = tpu.matmul %102, %144, %cst_71 {dimension_numbers = #tpu.dot_dimension_numbers<[1], [0], [0], [1], [0, 0, 1, 1], [], []>} : vector<8x128xbf16>, vector<128x128xbf16>, vector<8x128xf32> -> vector<8x128xf32>
    %146 = arith.addf %142, %145 : vector<8x128xf32>
    %147 = vector.broadcast %105 : vector<8x1xf32> to vector<8x128xf32>
    %148 = arith.mulf %146, %147 : vector<8x128xf32>
    %c0_72 = arith.constant 0 : index
    %c0_73 = arith.constant 0 : index
    %149 = vector.load %arg4[%c0_72, %c0_73] : memref<1x128xf32, #tpu.memory_space<vmem>>, vector<1x128xf32>
    %150 = vector.broadcast %149 : vector<1x128xf32> to vector<8x128xf32>
    %151 = arith.addf %148, %150 : vector<8x128xf32>
    %c0_74 = arith.constant 0 : index
    %c0_75 = arith.constant 0 : index
    %152 = vector.load %arg5[%c0_74, %c0_75] : memref<8x128xf32, #tpu.memory_space<vmem>>, vector<8x128xf32>
    tpu.vector_store %arg5[%c0_74, %c0_75], %151 {strides = array<i32>} : memref<8x128xf32, #tpu.memory_space<vmem>>, vector<8x128xf32>,
    return
  }
  func.func @transform_1(%arg0: i32, %arg1: memref<160xi32, #tpu.memory_space<smem>>) -> (i32, i32, i32) {
    %c0_i32 = arith.constant 0 : i32
    %c0_i32_0 = arith.constant 0 : i32
    %c0_i32_1 = arith.constant 0 : i32
    %c0_i32_2 = arith.constant 0 : i32
    return %c0_i32, %c0_i32_0, %c0_i32_1 : i32, i32, i32
  }
  func.func @transform_2(%arg0: i32, %arg1: memref<160xi32, #tpu.memory_space<smem>>) -> (i32, i32) {
    %c0_i32 = arith.constant 0 : i32
    %c0_i32_0 = arith.constant 0 : i32
    %c0_i32_1 = arith.constant 0 : i32
    return %c0_i32, %c0_i32_0 : i32, i32
  }
  func.func @transform_3(%arg0: i32, %arg1: memref<160xi32, #tpu.memory_space<smem>>) -> (i32, i32) {
    %c0_i32 = arith.constant 0 : i32
    %c0_i32_0 = arith.constant 0 : i32
    return %arg0, %c0_i32 : i32, i32
  }
}

</mosaic_0001>

<bundles_post_ra>
// kernel: tpu_custom_call.1
= control target key start
LH: loop header
LB: loop body
LE: loop exit
PB: predicated region body
PF: predicated region fallthrough
CT: control target
= control target key end

     0   :  { %s3039_s18 = smov [#allocation5]   ;;  %s4050_s0 = inlined_call_operand.hbm [shape: s32[160], index: 0, kind: input, shape index: {}]   ;;  %s4051_s1 = inlined_call_operand.hbm [shape: f32[256,128], index: 1, kind: input, shape index: {}]   ;;  %s4052_s2 = inlined_call_operand.hbm [shape: bf16[10,128,128], index: 2, kind: input, shape index: {}]   ;;  %s4053_s3 = inlined_call_operand.vmem [shape: f32[1,128], index: 3, kind: input, shape index: {}]   ;;  %s4054_s4 = inlined_call_operand.hbm [shape: f32[8,128], index: 4, kind: output, shape index: {}]  }
   0x1   :  { %s10_s17 = sshll.u32 %s4050_s0, 4  ;;  %s11_s17 = int_to_ptr.hbm [resolvable:$true] %s10_s17 }
   0x2   :  { %13 = dma.hbm_to_smem %s11_s17, 32, %s3039_s18, [#allocation4] }
   0x3   :  { %3015 = dma.done.wait [#allocation4], 32 }
   0x4   :  { %3016 = vsyncadd [#allocation4], 4294967264 }
   0x5   :  { %16 = sfence }
   0x6   :  { %17 = vsyncpa [#allocation7], 0 }
   0x7   :  { %18 = vsyncpa [#allocation8], 0  ;;  %s23_s21 = sshll.u32 %s4052_s2, 4  ;;  %s3040_s22 = smov [#allocation6]   ;;  %s24_s21 = int_to_ptr.hbm [resolvable:$true] %s23_s21 }
   0x8   :  { %s25_s23 = sshll.u32 %s3040_s22, 4  ;;  %s3041_s24 = smov 64   ;;  %s26_s23 = int_to_ptr.vmem [resolvable:$true] %s25_s23 }
   0x9   :  { %s3042_s25 = smov 4  }
   0xa   :  { %31 = dma.hbm_to_vmem [thread:$0]  %s24_s21, 10240, %s26_s23, [#allocation7], %s3041_s24, %s3041_s24, %s3042_s25  }
   0xb   :  { %3017 = dma.done.wait [#allocation7], 10240  }
   0xc   :  { %3018 = vsyncadd [#allocation7], 4294957056  ;;  %s3076_s0 = smov 0  }
   0xd LB: > { %s3081_s26 = smov 0   ;;  %s3025_s0 = sphi %s3076_s0, %s48_s0  }
   0xe LB: >> { %s55_s2 = smul.u32 20, %s3025_s0  ;;  %s2955_s15 = scalar_lea.hbm %s4051_s1, 256  ;;  %s3029_s26 = sphi %s3081_s26, %s54_s26  }
   0xf   : >> { %s63_s27 = smul.u32 24, %s3025_s0 }
  0x10   : >> { %s56_s28 = sadd.s32 %s3029_s26, %s55_s2 }
  0x11   : >> { %s57_s29 = sld [smem:[#allocation5 + %s56_s28]]  ;;  %s64_s30 = sadd.s32 %s3029_s26, %s63_s27 }
  0x12   : >> { %s65_s5 = scalar_lea.vmem [#allocation2], %s64_s30 }
  0x13   : >> { %s75_s6 = sshll.u32 %s65_s5, 4  ;;  %s76_s6 = int_to_ptr.vmem [resolvable:$true] %s75_s6 }
  0x17   : >> { %p58_p0 = scmp.gt.s32.totalorder %s57_s29, 0  ;;  %p2458_p1 = scmp.lt.s32.totalorder %s57_s29, 255 }
  0x19   : >> { %s4176_s29 = smov (!%p58_p0, %s57_s29), 0 }
  0x1a   : >> { %s4178_s29 = smov (!%p2458_p1, %s4176_s29), 255 }
  0x1b   : >> { %s62_s9 = scalar_lea.hbm %s4051_s1, %s4178_s29 }
  0x1c   : >> { %s73_s10 = sshll.u32 %s62_s9, 4  ;;  %s74_s10 = int_to_ptr.hbm [resolvable:$true] %s73_s10 }
  0x1d   : >> { %s2951_s11 = sshra.s32 %s74_s10, 4  ;;  %s2952_s11 = int_to_ptr.hbm [resolvable:$true] %s2951_s11 }
  0x1e   : >> { %s2953_s12 = scalar_lea.hbm %s2952_s11, 1  ;;  %p2956_p3 = scmp.lt.s32.totalorder %s2952_s11, %s4051_s1 }
  0x1f   : >> { %p2954_p2 = scmp.ne.s32.totalorder %s2952_s11, %s2953_s12  ;;  %p2957_p4 = scmp.lt.s32.totalorder %s2955_s15, %s2953_s12 }
  0x21   : >> { %p2958_p5 = por %p2957_p4, %p2956_p3 }
  0x23   : >> { %p2959_p6 = pnand %p2958_p5, %p2954_p2 }
  0x25   : >> { %2962 = shalt.err (!%p2959_p6)  }
  0x26   : >> { %s2963_s18 = sshra.s32 %s76_s6, 4  ;;  %s3043_s20 = smov [#allocation2]   ;;  %s2964_s18 = int_to_ptr.vmem [resolvable:$true] %s2963_s18 }
  0x27   : >> { %s2965_s19 = scalar_lea.vmem %s2964_s18, 1  ;;  %s2967_s21 = scalar_lea.vmem %s3043_s20, 384 }
  0x28   : >> { %p2966_p7 = scmp.ne.s32.totalorder %s2964_s18, %s2965_s19  ;;  %p2968_p8 = scmp.lt.s32.totalorder %s2964_s18, [#allocation2] }
  0x29   : >> { %p2969_p9 = scmp.lt.s32.totalorder %s2967_s21, %s2965_s19 }
  0x2b   : >> { %p2970_p10 = por %p2969_p9, %p2968_p8 }
  0x2d   : >> { %p2971_p11 = pnand %p2970_p10, %p2966_p7 }
  0x2f   : >> { %2974 = shalt.err (!%p2971_p11)  }
  0x30   : >> { %78 = dma.hbm_to_vmem [thread:$0]  %s74_s10, 16, %s76_s6, [#allocation3] }
  0x31   : >> { %s54_s26 = sadd.s32 1, %s3029_s26  }
  0x32   : >> { %p51_p12 = scmp.ge.s32.totalorder %s54_s26, 20  }
  0x33   : > { %s48_s0 = sadd.s32 (%p51_p12), 1, %s3025_s0  }
  0x34   : > { %53 = sbr.rel (!%p51_p12) target bundleno = 14 (0xe), region = 107  ;;  %p45_p13 = scmp.ge.s32.totalorder (%p51_p12), %s48_s0, 8  }
  0x39   :  { %47 = sbr.rel (!%p45_p13) target bundleno = 13 (0xd), region = 118  ;;  %s3031_s22 = smov (%p45_p13), 0  }
  0x3e LB: > { %s3035_s23 = smov 0   ;;  %s3033_s22 = sphi %s3031_s22, %s131_s22  }
  0x3f LB: >> { %3019 = dma.done.wait [#allocation3], 16  ;;  %s3037_s23 = sphi %s3035_s23, %s137_s23  }
  0x40   : >> { %3020 = vsyncadd [#allocation3], 4294967280  ;;  %s137_s23 = sadd.s32 1, %s3037_s23  }
  0x41   : >> { %p134_p0 = scmp.ge.s32.totalorder %s137_s23, 20  }
  0x42   : > { %s131_s22 = sadd.s32 (%p134_p0), 1, %s3033_s22  }
  0x43   : > { %136 = sbr.rel (!%p134_p0) target bundleno = 63 (0x3f), region = 151  ;;  %p128_p1 = scmp.ge.s32.totalorder (%p134_p0), %s131_s22, 8  }
  0x48   :  { %130 = sbr.rel (!%p128_p1) target bundleno = 62 (0x3e), region = 162  ;;  %v2810_v0 = vld [vmem:[#allocation6 + $0x78] sm:$0xff] (%p128_p1)  ;;  %v2809_v4 = vld [vmem:[#allocation6 + $0x70] sm:$0xff] (%p128_p1)  ;;  %v2808_v8 = vld [vmem:[#allocation6 + $0x68] sm:$0xff] (%p128_p1)  ;;  %vm196_vm0 = vcmask (%p128_p1), 1041408   ;;  %vm277_vm1 = vcmask (%p128_p1), 1041409  }
  0x49   :  { %v2802_v1 = vld [vmem:[#allocation6 + $0x38] sm:$0xff] (%p128_p1)  ;;  %1446 = vmatpush.bf16.msra.mxu0 (%p128_p1), %v2810_v0  ;;  %v2801_v5 = vld [vmem:[#allocation6 + $0x30] sm:$0xff] (%p128_p1)  ;;  %v2800_v9 = vld [vmem:[#allocation6 + $0x28] sm:$0xff] (%p128_p1)  ;;  %vm279_vm2 = vcmask (%p128_p1), 1042434   ;;  %vm281_vm3 = vcmask (%p128_p1), 1043459   ;;  %vm283_vm4 = vcmask (%p128_p1), 1044484  }
  0x4a   :  { %v2818_v2 = vld [vmem:[#allocation6 + $0xb8] sm:$0xff] (%p128_p1)  ;;  %1532 = vmatpush.bf16.msra.mxu1 (%p128_p1), %v2802_v1  ;;  %v2817_v6 = vld [vmem:[#allocation6 + $0xb0] sm:$0xff] (%p128_p1)  ;;  %v2816_v10 = vld [vmem:[#allocation6 + $0xa8] sm:$0xff] (%p128_p1)  ;;  %vm285_vm5 = vcmask (%p128_p1), 1045509   ;;  %vm287_vm6 = vcmask (%p128_p1), 1046534   ;;  %vm289_vm7 = vcmask (%p128_p1), 1047559  }
  0x4b   :  { %v2826_v3 = vld [vmem:[#allocation6 + $0xf8] sm:$0xff] (%p128_p1)  ;;  %1635 = vmatpush.bf16.msra.mxu2 (%p128_p1), %v2818_v2  ;;  %v2825_v7 = vld [vmem:[#allocation6 + $0xf0] sm:$0xff] (%p128_p1)  ;;  %v2824_v11 = vld [vmem:[#allocation6 + $0xe8] sm:$0xff] (%p128_p1)  ;;  %s3044_s25 = smov (%p128_p1), [#allocation9]   ;;  %s2391_s27 = sshll.u32 (%p128_p1), %s4054_s4, 4  ;;  %s2392_s27 = int_to_ptr.hbm [resolvable:$true] %s2391_s27 }
  0x4c   :  { %1739 = vmatpush.bf16.msra.mxu3 (%p128_p1), %v2826_v3  ;;  %v2807_v12 = vld [vmem:[#allocation6 + $0x60] sm:$0xff] (%p128_p1)  ;;  %v2806_v16 = vld [vmem:[#allocation6 + $0x58] sm:$0xff] (%p128_p1)  ;;  %v154_v21 = vld [vmem:[#allocation2 + $0x30] sm:$0xff] (%p128_p1)  ;;  %s2389_s0 = sshll.u32 (%p128_p1), %s3044_s25, 4  ;;  %s2390_s0 = int_to_ptr.vmem [resolvable:$true] %s2389_s0 }
  0x4d   :  { %1447 = vmatpush.bf16.msra.mxu0 %v2809_v4  ;;  %v2799_v13 = vld [vmem:[#allocation6 + $0x20] sm:$0xff]  ;;  %v2798_v17 = vld [vmem:[#allocation6 + $0x18] sm:$0xff]  ;;  %v157_v22 = vld [vmem:[#allocation2 + $0x48] sm:$0xff]  ;;  %v3109_v27 = vmax.f32 %v154_v21, 0.0 }
  0x4e   :  { %1533 = vmatpush.bf16.msra.mxu1 %v2801_v5  ;;  %v2815_v14 = vld [vmem:[#allocation6 + $0xa0] sm:$0xff]  ;;  %v2814_v18 = vld [vmem:[#allocation6 + $0x98] sm:$0xff]  ;;  %v166_v29 = vld [vmem:[#allocation2 + $0x90] sm:$0xff]  ;;  %v3111_v31 = vmax.f32 %v157_v22, 0.0 }
  0x4f   :  { %1636 = vmatpush.bf16.msra.mxu2 %v2817_v6  ;;  %v2823_v15 = vld [vmem:[#allocation6 + $0xe0] sm:$0xff]  ;;  %v151_v20 = vld [vmem:[#allocation2 + $0x18] sm:$0xff]  ;;  %v169_v30 = vld [vmem:[#allocation2 + $0xa8] sm:$0xff]  ;;  %v3117_v34 = vmax.f32 %v166_v29, 0.0  ;;  %v211_v40 = vsel %vm196_vm0, %v3109_v27, 0.0 }
  0x50   :  { %1740 = vmatpush.bf16.msra.mxu3 %v2825_v7  ;;  %v148_v19 = vld [vmem:[#allocation2] sm:$0xff]  ;;  %v163_v24 = vld [vmem:[#allocation2 + $0x78] sm:$0xff]  ;;  %v3107_v26 = vmax.f32 %v151_v20, 0.0  ;;  %v3119_v35 = vmax.f32 %v169_v30, 0.0  ;;  %v218_v41 = vsel %vm196_vm0, %v3111_v31, 0.0  ;;  %v2805_v42 = vld [vmem:[#allocation6 + $0x50] sm:$0xff] }
  0x51   :  { %1448 = vmatpush.bf16.msra.mxu0 %v2808_v8  ;;  %v160_v23 = vld [vmem:[#allocation2 + $0x60] sm:$0xff]  ;;  %v3105_v25 = vmax.f32 %v148_v19, 0.0  ;;  %v2822_v28 = vld [vmem:[#allocation6 + $0xd8] sm:$0xff]  ;;  %v3115_v33 = vmax.f32 %v163_v24, 0.0  ;;  %v2797_v43 = vld [vmem:[#allocation6 + $0x10] sm:$0xff]  ;;  %v212_v44 = vrot.slane %v211_v40, 4 }
  0x52   :  { %1534 = vmatpush.bf16.msra.mxu1 %v2800_v9  ;;  %v3113_v32 = vmax.f32 %v160_v23, 0.0  ;;  %v204_v37 = vsel %vm196_vm0, %v3107_v26, 0.0  ;;  %v219_v45 = vrot.slane %v218_v41, 4  ;;  %v2813_v48 = vld [vmem:[#allocation6 + $0x90] sm:$0xff]  ;;  %v239_v56 = vsel %vm196_vm0, %v3117_v34, 0.0  ;;  %v2804_v62 = vld [vmem:[#allocation6 + $0x48] sm:$0xff] }
  0x53   :  { %1637 = vmatpush.bf16.msra.mxu2 %v2816_v10  ;;  %v197_v36 = vsel %vm196_vm0, %v3105_v25, 0.0  ;;  %v205_v39 = vrot.slane %v204_v37, 4  ;;  %v232_v47 = vsel %vm196_vm0, %v3115_v33, 0.0  ;;  %v2821_v49 = vld [vmem:[#allocation6 + $0xd0] sm:$0xff]  ;;  %v213_v54 = vadd.f32 %v212_v44, %v211_v40  ;;  %v2796_v63 = vld [vmem:[#allocation6 + $0x8] sm:$0xff]  ;;  %v2795_v19 = vld [vmem:[#allocation6] sm:$0xff] }
  0x54   :  { %1741 = vmatpush.bf16.msra.mxu3 %v2824_v11  ;;  %v198_v38 = vrot.slane %v197_v36, 4  ;;  %v225_v46 = vsel %vm196_vm0, %v3113_v32, 0.0  ;;  %v233_v53 = vrot.slane %v232_v47, 4  ;;  %v220_v55 = vadd.f32 %v219_v45, %v218_v41  ;;  %v2812_v4 = vld [vmem:[#allocation6 + $0x88] sm:$0xff]  ;;  %v2811_v24 = vld [vmem:[#allocation6 + $0x80] sm:$0xff] }
  0x55   :  { %1449 = vmatpush.bf16.msra.mxu0 %v2807_v12  ;;  %v206_v51 = vadd.f32 %v205_v39, %v204_v37  ;;  %v226_v52 = vrot.slane %v225_v46, 4  ;;  %v246_v57 = vsel %vm196_vm0, %v3119_v35, 0.0  ;;  %v214_v0 = vrot.slane %v213_v54, 2  ;;  %v2820_v5 = vld [vmem:[#allocation6 + $0xc8] sm:$0xff]  ;;  %v2850_v39 = vld [vmem:[#allocation6 + $0x1b8] sm:$0xff]  ;;  %v2819_v44 = vld [vmem:[#allocation6 + $0xc0] sm:$0xff] }
  0x56   :  { %1535 = vmatpush.bf16.msra.mxu1 %v2799_v13  ;;  %v199_v50 = vadd.f32 %v198_v38, %v197_v36  ;;  %v234_v61 = vadd.f32 %v233_v53, %v232_v47  ;;  %v221_v1 = vrot.slane %v220_v55, 2  ;;  %v240_v2 = vrot.slane %v239_v56, 4  ;;  %v2842_v38 = vld [vmem:[#allocation6 + $0x178] sm:$0xff] }
  0x57   :  { %1638 = vmatpush.bf16.msra.mxu2 %v2815_v14  ;;  %v207_v59 = vrot.slane %v206_v51, 2  ;;  %v227_v60 = vadd.f32 %v226_v52, %v225_v46  ;;  %v247_v3 = vrot.slane %v246_v57, 4  ;;  %v215_v10 = vadd.f32 %v214_v0, %v213_v54  ;;  %v2833_v54 = vld [vmem:[#allocation6 + $0x130] sm:$0xff] }
  0x58   :  { %1742 = vmatpush.bf16.msra.mxu3 %v2823_v15  ;;  %v200_v58 = vrot.slane %v199_v50, 2  ;;  %v235_v9 = vrot.slane %v234_v61, 2  ;;  %v222_v11 = vadd.f32 %v221_v1, %v220_v55  ;;  %v241_v12 = vadd.f32 %v240_v2, %v239_v56 }
  0x59   :  { %1450 = vmatpush.bf16.msra.mxu0 %v2806_v16  ;;  %v208_v7 = vadd.f32 %v207_v59, %v206_v51  ;;  %v228_v8 = vrot.slane %v227_v60, 2  ;;  %v248_v13 = vadd.f32 %v247_v3, %v246_v57  ;;  %v216_v20 = vrot.slane %v215_v10, 1  ;;  %v2841_v59 = vld [vmem:[#allocation6 + $0x170] sm:$0xff] }
  0x5a   :  { %1536 = vmatpush.bf16.msra.mxu1 %v2798_v17  ;;  %v201_v6 = vadd.f32 %v200_v58, %v199_v50  ;;  %v236_v17 = vadd.f32 %v235_v9, %v234_v61  ;;  %v223_v21 = vrot.slane %v222_v11, 1  ;;  %v242_v22 = vrot.slane %v241_v12, 2 }
  0x5b   :  { %1639 = vmatpush.bf16.msra.mxu2 %v2814_v18  ;;  %v209_v15 = vrot.slane %v208_v7, 1  ;;  %v229_v16 = vadd.f32 %v228_v8, %v227_v60  ;;  %v2803_v18 = vld [vmem:[#allocation6 + $0x40] sm:$0xff]  ;;  %v249_v23 = vrot.slane %v248_v13, 2  ;;  %v217_v40 = vadd.f32 %v216_v20, %v215_v10  ;;  %v2849_v60 = vld [vmem:[#allocation6 + $0x1b0] sm:$0xff] }
  0x5c   :  { %1743 = vmatpush.bf16.msra.mxu3 %v2822_v28  ;;  %v202_v14 = vrot.slane %v201_v6, 1  ;;  %v2834_v28 = vld [vmem:[#allocation6 + $0x138] sm:$0xff]  ;;  %v237_v37 = vrot.slane %v236_v17, 1  ;;  %v224_v41 = vadd.f32 %v223_v21, %v222_v11  ;;  %v425_v0 = vrot.slane %v3105_v25, 4  ;;  %v2857_v8 = vld [vmem:[#allocation6 + $0x1f0] sm:$0xff]  ;;  %v2832_v11 = vld [vmem:[#allocation6 + $0x128] sm:$0xff] }
  0x5d   :  { %1451 = vmatpush.bf16.msra.mxu0 %v2805_v42  ;;  %v210_v30 = vadd.f32 %v209_v15, %v208_v7  ;;  %v230_v36 = vrot.slane %v229_v16, 1  ;;  %v243_v42 = vadd.f32 %v242_v22, %v241_v12  ;;  %v3141_v52 = vmul.f32 0.5, %v217_v40  ;;  %v2848_v21 = vld [vmem:[#allocation6 + $0x1a8] sm:$0xff] }
  0x5e   :  { %1537 = vmatpush.bf16.msra.mxu1 %v2797_v43  ;;  %v203_v29 = vadd.f32 %v202_v14, %v201_v6  ;;  %v250_v43 = vadd.f32 %v249_v23, %v248_v13  ;;  %v238_v46 = vadd.f32 %v237_v37, %v236_v17  ;;  %v3143_v53 = vmul.f32 0.5, %v224_v41  ;;  %v2856_v37 = vld [vmem:[#allocation6 + $0x1e8] sm:$0xff] }
  0x5f   :  { %1640 = vmatpush.bf16.msra.mxu2 %v2813_v48  ;;  %v231_v45 = vadd.f32 %v230_v36, %v229_v16  ;;  %v3139_v48 = vmul.f32 0.5, %v210_v30  ;;  %v244_v50 = vrot.slane %v243_v42, 1  ;;  %4093 = vst [vmem:[#allocation22_spill] sm:$0xff] %v3141_v52  ;;  %v426_v9 = vrot.slane %v3107_v26, 4 }
  0x60   :  { %1744 = vmatpush.bf16.msra.mxu3 %v2821_v49  ;;  %v3137_v47 = vmul.f32 0.5, %v203_v29  ;;  %v2858_v49 = vld [vmem:[#allocation6 + $0x1f8] sm:$0xff]  ;;  %v251_v51 = vrot.slane %v250_v43, 1  ;;  %4094 = vst [vmem:[#allocation23_spill] sm:$0xff] %v3143_v53  ;;  %v3147_v56 = vmul.f32 0.5, %v238_v46  ;;  %v264_v1 = vmul.f32 %v3143_v53, %v3143_v53 }
  0x61   :  { %1452 = vmatpush.bf16.msra.mxu0 %v2804_v62  ;;  %4092 = vst [vmem:[#allocation21_spill] sm:$0xff] %v3139_v48  ;;  %v3145_v55 = vmul.f32 0.5, %v231_v45  ;;  %v262_v58 = vmul.f32 %v3139_v48, %v3139_v48  ;;  %v245_v61 = vadd.f32 %v244_v50, %v243_v42  ;;  %v427_v12 = vrot.slane %v3109_v27, 4 }
  0x62   :  { %1538 = vmatpush.bf16.msra.mxu1 %v2796_v63  ;;  %4091 = vst [vmem:[#allocation20_spill] sm:$0xff] %v3137_v47  ;;  %v261_v57 = vmul.f32 %v3137_v47, %v3137_v47  ;;  %v252_v62 = vadd.f32 %v251_v51, %v250_v43  ;;  %v263_v63 = vmul.f32 %v3141_v52, %v3141_v52  ;;  %v428_v13 = vrot.slane %v3111_v31, 4 }
  0x63   :  { %1641 = vmatpush.bf16.msra.mxu2 %v2812_v4  ;;  %4095 = vst [vmem:[#allocation24_spill] sm:$0xff] %v3145_v55  ;;  %v265_v2 = vmul.f32 %v3145_v55, %v3145_v55  ;;  %v266_v3 = vmul.f32 %v3147_v56, %v3147_v56  ;;  %v429_v14 = vrot.slane %v3113_v32, 4  ;;  %v431_v22 = vrot.slane %v3117_v34, 4 }
  0x64   :  { %1745 = vmatpush.bf16.msra.mxu3 %v2820_v5  ;;  %4096 = vst [vmem:[#allocation25_spill] sm:$0xff] %v3147_v56  ;;  %v278_v4 = vsel %vm277_vm1, %v262_v58, %v261_v57  ;;  %v3163_v5 = vmul.f32 0.5, %v245_v61  ;;  %v3165_v6 = vmul.f32 0.5, %v252_v62  ;;  %v432_v23 = vrot.slane %v3119_v35, 4 }
  0x65   :  { %1453 = vmatpush.bf16.msra.mxu0 %v2803_v18  ;;  %v280_v7 = vsel %vm279_vm2, %v263_v63, %v278_v4  ;;  %v2840_v18 = vld [vmem:[#allocation6 + $0x168] sm:$0xff]  ;;  %v448_v30 = vsel %vm196_vm0, %v426_v9, 0.0  ;;  %v455_v36 = vsel %vm196_vm0, %v427_v12, 0.0  ;;  %v462_v41 = vsel %vm196_vm0, %v428_v13, 0.0 }
  0x66   :  { %1539 = vmatpush.bf16.msra.mxu1 %v2795_v19  ;;  %4097 = vst [vmem:[#allocation26_spill] sm:$0xff] %v3163_v5  ;;  %v282_v10 = vsel %vm281_vm3, %v264_v1, %v280_v7  ;;  %v267_v15 = vmul.f32 %v3163_v5, %v3163_v5  ;;  %v268_v16 = vmul.f32 %v3165_v6, %v3165_v6  ;;  %v430_v19 = vrot.slane %v3115_v33, 4 }
  0x67   :  { %1642 = vmatpush.bf16.msra.mxu2 %v2811_v24  ;;  %4098 = vst [vmem:[#allocation27_spill] sm:$0xff] %v3165_v6  ;;  %v284_v17 = vsel %vm283_vm4, %v265_v2, %v282_v10  ;;  %v441_v24 = vsel %vm196_vm0, %v425_v0, 0.0  ;;  %v456_v40 = vrot.slane %v455_v36, 4  ;;  %v463_v43 = vrot.slane %v462_v41, 4 }
  0x68   :  { %1746 = vmatpush.bf16.msra.mxu3 %v2819_v44  ;;  %v286_v20 = vsel %vm285_vm5, %v266_v3, %v284_v17  ;;  %v442_v29 = vrot.slane %v441_v24, 4  ;;  %v469_v44 = vsel %vm196_vm0, %v429_v14, 0.0  ;;  %v476_v45 = vsel %vm196_vm0, %v430_v19, 0.0 }
  0x69   :  { %1843 = vmatpush.bf16.msrb.mxu0 %v2834_v28  ;;  %v288_v28 = vsel %vm287_vm6, %v267_v15, %v286_v20  ;;  %v470_v50 = vrot.slane %v469_v44, 4  ;;  %v477_v51 = vrot.slane %v476_v45, 4  ;;  %v464_v57 = vadd.f32 %v463_v43, %v462_v41  ;;  %v2831_v43 = vld [vmem:[#allocation6 + $0x120] sm:$0xff] }
  0x6a   :  { %1947 = vmatpush.bf16.msrb.mxu1 %v2842_v38  ;;  %v290_v38 = vsel %vm289_vm7, %v268_v16, %v288_v28  ;;  %v443_v42 = vadd.f32 %v442_v29, %v441_v24  ;;  %v483_v58 = vsel %vm196_vm0, %v431_v22, 0.0 }
  0x6b   :  { %2051 = vmatpush.bf16.msrb.mxu2 %v2850_v39  ;;  %v449_v39 = vrot.slane %v448_v30, 4  ;;  %292 = vadd.xlane.f32.xlu0 %v290_v38  ;;  %v471_v62 = vadd.f32 %v470_v50, %v469_v44  ;;  %v478_v63 = vadd.f32 %v477_v51, %v476_v45  ;;  %v465_v1 = vrot.slane %v464_v57, 2  ;;  %v2839_v44 = vld [vmem:[#allocation6 + $0x160] sm:$0xff] }
  0x6c   :  { %2155 = vmatpush.bf16.msrb.mxu3 %v2858_v49  ;;  %v457_v49 = vadd.f32 %v456_v40, %v455_v36  ;;  %v484_v2 = vrot.slane %v483_v58, 4  ;;  %v152_v51 = vld [vmem:[#allocation2 + $0x20] sm:$0xff] }
  0x6d   :  { %1844 = vmatpush.bf16.msrb.mxu0 %v2833_v54  ;;  %v450_v46 = vadd.f32 %v449_v39, %v448_v30  ;;  %v444_v54 = vrot.slane %v443_v42, 2  ;;  %v479_v9 = vrot.slane %v478_v63, 2 }
  0x6e   :  { %1948 = vmatpush.bf16.msrb.mxu1 %v2841_v59  ;;  %v490_v59 = vsel %vm196_vm0, %v432_v23, 0.0  ;;  %v458_v61 = vrot.slane %v457_v49, 2  ;;  %v485_v12 = vadd.f32 %v484_v2, %v483_v58  ;;  %v161_v2 = vld [vmem:[#allocation2 + $0x68] sm:$0xff] }
  0x6f   :  { %2052 = vmatpush.bf16.msrb.mxu2 %v2849_v60  ;;  %v451_v60 = vrot.slane %v450_v46, 2  ;;  %v445_v0 = vadd.f32 %v444_v54, %v443_v42  ;;  %v491_v3 = vrot.slane %v490_v59, 4  ;;  %v480_v17 = vadd.f32 %v479_v9, %v478_v63  ;;  %v149_v42 = vld [vmem:[#allocation2 + $0x8] sm:$0xff]  ;;  %v2847_v54 = vld [vmem:[#allocation6 + $0x1a0] sm:$0xff] }
  0x70   :  { %2156 = vmatpush.bf16.msrb.mxu3 %v2857_v8  ;;  %v459_v7 = vadd.f32 %v458_v61, %v457_v49  ;;  %v472_v8 = vrot.slane %v471_v62, 2  ;;  %v486_v20 = vrot.slane %v485_v12, 2  ;;  %v155_v61 = vld [vmem:[#allocation2 + $0x38] sm:$0xff] }
  0x71   :  { %1845 = vmatpush.bf16.msrb.mxu0 %v2832_v11  ;;  %v452_v4 = vadd.f32 %v451_v60, %v450_v46  ;;  %v446_v10 = vrot.slane %v445_v0, 1  ;;  %v466_v11 = vadd.f32 %v465_v1, %v464_v57  ;;  %v492_v13 = vadd.f32 %v491_v3, %v490_v59  ;;  %v158_v1 = vld [vmem:[#allocation2 + $0x50] sm:$0xff]  ;;  %v164_v3 = vld [vmem:[#allocation2 + $0x80] sm:$0xff] }
  0x72   :  { %1949 = vmatpush.bf16.msrb.mxu1 %v2840_v18  ;;  %v460_v15 = vrot.slane %v459_v7, 1  ;;  %v473_v16 = vadd.f32 %v472_v8, %v471_v62  ;;  %v481_v28 = vrot.slane %v480_v17, 1  ;;  %v487_v30 = vadd.f32 %v486_v20, %v485_v12 }
  0x73   :  { %2053 = vmatpush.bf16.msrb.mxu2 %v2848_v21  ;;  %v453_v14 = vrot.slane %v452_v4, 1  ;;  %v447_v18 = vadd.f32 %v446_v10, %v445_v0  ;;  %v467_v19 = vrot.slane %v466_v11, 1  ;;  %v493_v21 = vrot.slane %v492_v13, 2  ;;  %v167_v10 = vld [vmem:[#allocation2 + $0x98] sm:$0xff] }
  0x74   :  { %2157 = vmatpush.bf16.msrb.mxu3 %v2856_v37  ;;  %v461_v23 = vadd.f32 %v460_v15, %v459_v7  ;;  %v474_v24 = vrot.slane %v473_v16, 1  ;;  %v482_v39 = vadd.f32 %v481_v28, %v480_v17  ;;  %v488_v45 = vrot.slane %v487_v30, 1  ;;  %v170_v15 = vld [vmem:[#allocation2 + $0xb0] sm:$0xff] }
  0x75   :  { %v454_v22 = vadd.f32 %v453_v14, %v452_v4  ;;  %v468_v29 = vadd.f32 %v467_v19, %v466_v11  ;;  %v494_v36 = vadd.f32 %v493_v21, %v492_v13  ;;  %v3192_v37 = vmul.f32 0.5, %v447_v18  ;;  %1846 = vmatpush.bf16.msrb.mxu0 %v2831_v43 }
  0x76   :  { %v475_v38 = vadd.f32 %v474_v24, %v473_v16  ;;  %v3196_v41 = vmul.f32 0.5, %v461_v23  ;;  %v3204_v58 = vmul.f32 0.5, %v482_v39  ;;  %1950 = vmatpush.bf16.msrb.mxu1 %v2839_v44  ;;  %v489_v62 = vadd.f32 %v488_v45, %v487_v30 }
  0x77   :  { %v3194_v40 = vmul.f32 0.5, %v454_v22  ;;  %v495_v46 = vrot.slane %v494_v36, 1  ;;  %v3198_v49 = vmul.f32 0.5, %v468_v29  ;;  %v505_v50 = vmul.f32 %v3192_v37, %v3192_v37  ;;  %2054 = vmatpush.bf16.msrb.mxu2 %v2847_v54 }
  0x78   :  { %v3202_v57 = vmul.f32 0.5, %v475_v38  ;;  %v507_v60 = vmul.f32 %v3196_v41, %v3196_v41  ;;  %v3212_v4 = vmax.f32 %v149_v42, 0.0  ;;  %v510_v8 = vmul.f32 %v3204_v58, %v3204_v58 }
  0x79   :  { %v506_v59 = vmul.f32 %v3194_v40, %v3194_v40  ;;  %v496_v63 = vadd.f32 %v495_v46, %v494_v36  ;;  %v508_v0 = vmul.f32 %v3198_v49, %v3198_v49  ;;  %v3219_v11 = vmax.f32 %v152_v51, 0.0 }
  0x7a   :  { %v509_v7 = vmul.f32 %v3202_v57, %v3202_v57  ;;  %v3221_v12 = vmul.f32 0.5, %v489_v62  ;;  %v3226_v16 = vmax.f32 %v155_v61, 0.0  ;;  %v3229_v18 = vmax.f32 %v158_v1, 0.0 }
  0x7b   :  { %v521_v9 = vsel %vm277_vm1, %v506_v59, %v505_v50  ;;  %v3223_v13 = vmul.f32 0.5, %v496_v63  ;;  %v3231_v19 = vmax.f32 %v161_v2, 0.0  ;;  %v3233_v20 = vmax.f32 %v164_v3, 0.0 }
  0x7c   :  { %v522_v14 = vsel %vm279_vm2, %v507_v60, %v521_v9  ;;  %v511_v21 = vmul.f32 %v3221_v12, %v3221_v12  ;;  %v3240_v24 = vmax.f32 %v167_v10, 0.0  ;;  %v3243_v29 = vmax.f32 %v170_v15, 0.0 }
  0x7d   :  { %v523_v17 = vsel %vm281_vm3, %v508_v0, %v522_v14  ;;  %v512_v22 = vmul.f32 %v3223_v13, %v3223_v13  ;;  %v655_v30 = vsel %vm196_vm0, %v3212_v4, 0.0  ;;  %v662_v36 = vsel %vm196_vm0, %v3219_v11, 0.0 }
  0x7e   :  { %v524_v23 = vsel %vm283_vm4, %v509_v7, %v523_v17  ;;  %v656_v39 = vrot.slane %v655_v30, 4  ;;  %v663_v42 = vrot.slane %v662_v36, 4  ;;  %v669_v43 = vsel %vm196_vm0, %v3226_v16, 0.0 }
  0x7f   :  { %v525_v28 = vsel %vm285_vm5, %v510_v8, %v524_v23  ;;  %v670_v45 = vrot.slane %v669_v43, 4  ;;  %v676_v46 = vsel %vm196_vm0, %v3229_v18, 0.0  ;;  %v683_v50 = vsel %vm196_vm0, %v3231_v19, 0.0 }
  0x80   :  { %v526_v38 = vsel %vm287_vm6, %v511_v21, %v525_v28  ;;  %v657_v51 = vadd.f32 %v656_v39, %v655_v30  ;;  %v664_v54 = vadd.f32 %v663_v42, %v662_v36  ;;  %v677_v59 = vrot.slane %v676_v46, 4 }
  0x81   :  { %v527_v44 = vsel %vm289_vm7, %v512_v22, %v526_v38  ;;  %v684_v60 = vrot.slane %v683_v50, 4  ;;  %v671_v61 = vadd.f32 %v670_v45, %v669_v43  ;;  %v690_v62 = vsel %vm196_vm0, %v3233_v20, 0.0 }
  0x82   :  { %529 = vadd.xlane.f32.xlu1 %v527_v44  ;;  %v697_v63 = vsel %vm196_vm0, %v3240_v24, 0.0  ;;  %v704_v0 = vsel %vm196_vm0, %v3243_v29, 0.0  ;;  %v658_v1 = vrot.slane %v657_v51, 2  ;;  %v665_v2 = vrot.slane %v664_v54, 2 }
  0x83   :  { %v678_v3 = vadd.f32 %v677_v59, %v676_v46  ;;  %v685_v7 = vadd.f32 %v684_v60, %v683_v50  ;;  %v672_v8 = vrot.slane %v671_v61, 2  ;;  %v691_v9 = vrot.slane %v690_v62, 4 }
  0x84   :  { %v698_v10 = vrot.slane %v697_v63, 4  ;;  %v705_v14 = vrot.slane %v704_v0, 4  ;;  %v659_v15 = vadd.f32 %v658_v1, %v657_v51  ;;  %v666_v17 = vadd.f32 %v665_v2, %v664_v54 }
  0x85   :  { %v679_v21 = vrot.slane %v678_v3, 2  ;;  %v686_v22 = vrot.slane %v685_v7, 2  ;;  %v673_v23 = vadd.f32 %v672_v8, %v671_v61  ;;  %v692_v28 = vadd.f32 %v691_v9, %v690_v62 }
  0x86   :  { %v699_v30 = vadd.f32 %v698_v10, %v697_v63  ;;  %v706_v36 = vadd.f32 %v705_v14, %v704_v0  ;;  %v660_v38 = vrot.slane %v659_v15, 1  ;;  %v667_v39 = vrot.slane %v666_v17, 1 }
  0x87   :  { %v680_v42 = vadd.f32 %v679_v21, %v678_v3  ;;  %v687_v43 = vadd.f32 %v686_v22, %v685_v7  ;;  %v674_v44 = vrot.slane %v673_v23, 1  ;;  %v693_v45 = vrot.slane %v692_v28, 2 }
  0x88   :  { %v700_v46 = vrot.slane %v699_v30, 2  ;;  %v707_v50 = vrot.slane %v706_v36, 2  ;;  %v661_v59 = vadd.f32 %v660_v38, %v659_v15  ;;  %v668_v60 = vadd.f32 %v667_v39, %v666_v17 }
  0x89   :  { %v681_v6 = vrot.slane %v680_v42, 1  ;;  %v688_v5 = vrot.slane %v687_v43, 1  ;;  %v675_v51 = vadd.f32 %v674_v44, %v673_v23  ;;  %v694_v54 = vadd.f32 %v693_v45, %v692_v28 }
  0x8a   :  { %v701_v1 = vadd.f32 %v700_v46, %v699_v30  ;;  %v708_v2 = vadd.f32 %v707_v50, %v706_v36  ;;  %v3263_v63 = vmul.f32 0.5, %v661_v59  ;;  %v3265_v0 = vmul.f32 0.5, %v668_v60  ;;  %v2855_v36 = vld [vmem:[#allocation6 + $0x1e0] sm:$0xff] }
  0x8b   :  { %v682_v61 = vadd.f32 %v681_v6, %v680_v42  ;;  %v689_v62 = vadd.f32 %v688_v5, %v687_v43  ;;  %v695_v3 = vrot.slane %v694_v54, 1  ;;  %v3267_v9 = vmul.f32 0.5, %v675_v51  ;;  %2158 = vmatpush.bf16.msrb.mxu3 %v2855_v36 }
  0x8c   :  { %v702_v7 = vrot.slane %v701_v1, 1  ;;  %v709_v8 = vrot.slane %v708_v2, 1  ;;  %v719_v15 = vmul.f32 %v3263_v63, %v3263_v63  ;;  %v720_v6 = vmul.f32 %v3265_v0, %v3265_v0 }
  0x8d   :  { %v3269_v10 = vmul.f32 0.5, %v682_v61  ;;  %v3271_v14 = vmul.f32 0.5, %v689_v62  ;;  %v696_v5 = vadd.f32 %v695_v3, %v694_v54  ;;  %v721_v22 = vmul.f32 %v3267_v9, %v3267_v9 }
  0x8e   :  { %v703_v17 = vadd.f32 %v702_v7, %v701_v1  ;;  %v710_v21 = vadd.f32 %v709_v8, %v708_v2  ;;  %v735_v30 = vsel %vm277_vm1, %v720_v6, %v719_v15  ;;  %v310_v51 = vrot.slane %v3105_v25, 2  ;;  %v2830_v7 = vld [vmem:[#allocation6 + $0x118] sm:$0xff] }
  0x8f   :  { %v722_v23 = vmul.f32 %v3269_v10, %v3269_v10  ;;  %v723_v28 = vmul.f32 %v3271_v14, %v3271_v14  ;;  %v3284_v38 = vmul.f32 0.5, %v696_v5  ;;  %v736_v43 = vsel %vm279_vm2, %v721_v22, %v735_v30  ;;  %v2838_v8 = vld [vmem:[#allocation6 + $0x158] sm:$0xff]  ;;  %1847 = vmatpush.bf16.msrb.mxu0 %v2830_v7 }
  0x90   :  { %v3286_v39 = vmul.f32 0.5, %v703_v17  ;;  %v3288_v42 = vmul.f32 0.5, %v710_v21  ;;  %v311_v54 = vrot.slane %v3107_v26, 2  ;;  %v312_v1 = vrot.slane %v3109_v27, 2  ;;  %v2846_v21 = vld [vmem:[#allocation6 + $0x198] sm:$0xff]  ;;  %1951 = vmatpush.bf16.msrb.mxu1 %v2838_v8 }
  0x91   :  { %v737_v44 = vsel %vm281_vm3, %v722_v23, %v736_v43  ;;  %v724_v45 = vmul.f32 %v3284_v38, %v3284_v38  ;;  %v313_v61 = vrot.slane %v3111_v31, 2  ;;  %v314_v62 = vrot.slane %v3113_v32, 2  ;;  %2055 = vmatpush.bf16.msrb.mxu2 %v2846_v21 }
  0x92   :  { %4099 = vst [vmem:[#allocation28_spill] sm:$0xff] %v3286_v39  ;;  %v725_v46 = vmul.f32 %v3286_v39, %v3286_v39  ;;  %v726_v50 = vmul.f32 %v3288_v42, %v3288_v42  ;;  %v738_v59 = vsel %vm283_vm4, %v723_v28, %v737_v44  ;;  %v315_v3 = vrot.slane %v3115_v33, 2 }
  0x93   :  { %4100 = vst [vmem:[#allocation29_spill] sm:$0xff] %v3288_v42  ;;  %v739_v60 = vsel %vm285_vm5, %v724_v45, %v738_v59  ;;  %v316_v6 = vrot.slane %v3117_v34, 2  ;;  %v317_v5 = vrot.slane %v3119_v35, 2  ;;  %v326_v17 = vsel %vm196_vm0, %v310_v51, 0.0 }
  0x94   :  { %v740_v2 = vsel %vm287_vm6, %v725_v46, %v739_v60  ;;  %v327_v22 = vrot.slane %v326_v17, 4  ;;  %v333_v23 = vsel %vm196_vm0, %v311_v54, 0.0  ;;  %v340_v28 = vsel %vm196_vm0, %v312_v1, 0.0 }
  0x95   :  { %v741_v15 = vsel %vm289_vm7, %v726_v50, %v740_v2  ;;  %v347_v30 = vsel %vm196_vm0, %v313_v61, 0.0  ;;  %v334_v36 = vrot.slane %v333_v23, 4  ;;  %v341_v43 = vrot.slane %v340_v28, 4 }
  0x96   :  { %743 = vadd.xlane.f32.xlu2 %v741_v15  ;;  %v348_v44 = vrot.slane %v347_v30, 4  ;;  %v354_v45 = vsel %vm196_vm0, %v314_v62, 0.0  ;;  %v328_v46 = vadd.f32 %v327_v22, %v326_v17  ;;  %v361_v59 = vsel %vm196_vm0, %v315_v3, 0.0 }
  0x97   :  { %v355_v50 = vrot.slane %v354_v45, 4  ;;  %v368_v60 = vsel %vm196_vm0, %v316_v6, 0.0  ;;  %v335_v51 = vadd.f32 %v334_v36, %v333_v23  ;;  %v342_v54 = vadd.f32 %v341_v43, %v340_v28 }
  0x98   :  { %v349_v2 = vadd.f32 %v348_v44, %v347_v30  ;;  %v362_v1 = vrot.slane %v361_v59, 4  ;;  %v329_v15 = vrot.slane %v328_v46, 2  ;;  %v369_v7 = vrot.slane %v368_v60, 4 }
  0x99   :  { %v356_v61 = vadd.f32 %v355_v50, %v354_v45  ;;  %v375_v42 = vsel %vm196_vm0, %v317_v5, 0.0  ;;  %v336_v39 = vrot.slane %v335_v51, 2  ;;  %v343_v56 = vrot.slane %v342_v54, 2 }
  0x9a   :  { %v350_v62 = vrot.slane %v349_v2, 2  ;;  %v363_v8 = vadd.f32 %v362_v1, %v361_v59  ;;  %v330_v21 = vadd.f32 %v329_v15, %v328_v46  ;;  %v370_v22 = vadd.f32 %v369_v7, %v368_v60 }
  0x9b   :  { %v357_v17 = vrot.slane %v356_v61, 2  ;;  %v376_v55 = vrot.slane %v375_v42, 4  ;;  %v337_v3 = vadd.f32 %v336_v39, %v335_v51  ;;  %v344_v53 = vadd.f32 %v343_v56, %v342_v54 }
  0x9c   :  { %v351_v6 = vadd.f32 %v350_v62, %v349_v2  ;;  %v364_v23 = vrot.slane %v363_v8, 2  ;;  %v331_v28 = vrot.slane %v330_v21, 1  ;;  %v371_v36 = vrot.slane %v370_v22, 2 }
  0x9d   :  { %v358_v30 = vadd.f32 %v357_v17, %v356_v61  ;;  %v377_v43 = vadd.f32 %v376_v55, %v375_v42  ;;  %v338_v44 = vrot.slane %v337_v3, 1  ;;  %v345_v45 = vrot.slane %v344_v53, 1 }
  0x9e   :  { %v352_v50 = vrot.slane %v351_v6, 1  ;;  %v365_v5 = vadd.f32 %v364_v23, %v363_v8  ;;  %v332_v52 = vadd.f32 %v331_v28, %v330_v21  ;;  %v372_v47 = vadd.f32 %v371_v36, %v370_v22 }
  0x9f   :  { %v359_v48 = vrot.slane %v358_v30, 1  ;;  %v378_v59 = vrot.slane %v377_v43, 2  ;;  %v339_v46 = vadd.f32 %v338_v44, %v337_v3  ;;  %v346_v1 = vadd.f32 %v345_v45, %v344_v53 }
  0xa0   :  { %v353_v60 = vadd.f32 %v352_v50, %v351_v6  ;;  %v366_v15 = vrot.slane %v365_v5, 1  ;;  %v373_v56 = vrot.slane %v372_v47, 1  ;;  %v3318_v54 = vmul.f32 0.5, %v332_v52 }
  0xa1   :  { %v360_v39 = vadd.f32 %v359_v48, %v358_v30  ;;  %v379_v51 = vadd.f32 %v378_v59, %v377_v43  ;;  %v3320_v61 = vmul.f32 0.5, %v339_v46  ;;  %v3322_v55 = vmul.f32 0.5, %v346_v1 }
  0xa2   :  { %v367_v2 = vadd.f32 %v366_v15, %v365_v5  ;;  %v3324_v42 = vmul.f32 0.5, %v353_v60  ;;  %v374_v7 = vadd.f32 %v373_v56, %v372_v47  ;;  %v390_v53 = vmul.f32 %v3318_v54, %v3318_v54 }
  0xa3   :  { %v380_v62 = vrot.slane %v379_v51, 1  ;;  %v3326_v8 = vmul.f32 0.5, %v360_v39  ;;  %v391_v48 = vmul.f32 %v3320_v61, %v3320_v61  ;;  %v392_v52 = vmul.f32 %v3322_v55, %v3322_v55 }
  0xa4   :  { %v3330_v21 = vmul.f32 0.5, %v367_v2  ;;  %v393_v17 = vmul.f32 %v3324_v42, %v3324_v42  ;;  %v3338_v3 = vmul.f32 0.5, %v374_v7  ;;  %v532_v6 = vpack.c.bf16 %v3192_v37, %v3192_v37 }
  0xa5   :  { %v381_v22 = vadd.f32 %v380_v62, %v379_v51  ;;  %v394_v47 = vmul.f32 %v3326_v8, %v3326_v8  ;;  %v406_v28 = vsel %vm277_vm1, %v391_v48, %v390_v53  ;;  %v533_v30 = vpack.c.bf16 %v3194_v40, %v3194_v40 }
  0xa6   :  { %v395_v23 = vmul.f32 %v3330_v21, %v3330_v21  ;;  %v534_v36 = vpack.c.bf16 %v3196_v41, %v3196_v41  ;;  %v396_v44 = vmul.f32 %v3338_v3, %v3338_v3  ;;  %v407_v45 = vsel %vm279_vm2, %v392_v52, %v406_v28 }
  0xa7   :  { %v3351_v43 = vmul.f32 0.5, %v381_v22  ;;  %v535_v37 = vpack.c.bf16 %v3198_v49, %v3198_v49  ;;  %v408_v50 = vsel %vm281_vm3, %v393_v17, %v407_v45  ;;  %v536_v5 = vpack.c.bf16 %v3202_v57, %v3202_v57 }
  0xa8   :  { %v537_v40 = vpack.c.bf16 %v3204_v58, %v3204_v58  ;;  %v538_v41 = vpack.c.bf16 %v3221_v12, %v3221_v12  ;;  %v409_v46 = vsel %vm283_vm4, %v394_v47, %v408_v50  ;;  %v539_v1 = vpack.c.bf16 %v3223_v13, %v3223_v13 }
  0xa9   :  { %v397_v59 = vmul.f32 %v3351_v43, %v3351_v43  ;;  %v1570_v49 = vunpack.c.l.b16 %v532_v6  ;;  %v410_v60 = vsel %vm285_vm5, %v395_v23, %v409_v46  ;;  %v1571_v15 = vunpack.c.l.b16 %v533_v30 }
  0xaa   :  { %v1572_v39 = vunpack.c.l.b16 %v534_v36  ;;  %v1573_v57 = vunpack.c.l.b16 %v535_v37  ;;  %v411_v56 = vsel %vm287_vm6, %v396_v44, %v410_v60  ;;  %v1574_v58 = vunpack.c.l.b16 %v536_v5 }
  0xab   :  { %v1575_v51 = vunpack.c.l.b16 %v537_v40  ;;  %v1576_v2 = vunpack.c.l.b16 %v538_v41  ;;  %v412_v12 = vsel %vm289_vm7, %v397_v59, %v411_v56  ;;  %v1577_v7 = vunpack.c.l.b16 %v539_v1 }
  0xac   :  { %v1578_v62 = vsel %vm277_vm1, %v1571_v15, %v1570_v49  ;;  %v540_v53 = vrot.slane %v3105_v25, 6  ;;  %414 = vadd.xlane.f32.xlu0 %v412_v12  ;;  %v541_v48 = vrot.slane %v3107_v26, 6  ;;  %v542_v52 = vrot.slane %v3109_v27, 6 }
  0xad   :  { %v1579_v13 = vsel %vm279_vm2, %v1572_v39, %v1578_v62  ;;  %v543_v17 = vrot.slane %v3111_v31, 6  ;;  %v544_v47 = vrot.slane %v3113_v32, 6  ;;  %v545_v6 = vrot.slane %v3115_v33, 6 }
  0xae   :  { %v1580_v22 = vsel %vm281_vm3, %v1573_v57, %v1579_v13  ;;  %v546_v23 = vrot.slane %v3117_v34, 6  ;;  %v547_v25 = vrot.slane %v3119_v35, 6  ;;  %v556_v30 = vsel %vm196_vm0, %v540_v53, 0.0 }
  0xaf   :  { %v1581_v28 = vsel %vm283_vm4, %v1574_v58, %v1580_v22  ;;  %v563_v26 = vsel %vm196_vm0, %v541_v48, 0.0  ;;  %v557_v36 = vrot.slane %v556_v30, 4  ;;  %v570_v44 = vsel %vm196_vm0, %v542_v52, 0.0 }
  0xb0   :  { %v1582_v27 = vsel %vm285_vm5, %v1575_v51, %v1581_v28  ;;  %v564_v31 = vrot.slane %v563_v26, 4  ;;  %v571_v45 = vrot.slane %v570_v44, 4  ;;  %v577_v33 = vsel %vm196_vm0, %v543_v17, 0.0  ;;  %v2854_v51 = vld [vmem:[#allocation6 + $0x1d8] sm:$0xff] }
  0xb1   :  { %v1583_v32 = vsel %vm287_vm6, %v1576_v2, %v1582_v27  ;;  %v584_v34 = vsel %vm196_vm0, %v544_v47, 0.0  ;;  %v558_v35 = vadd.f32 %v557_v36, %v556_v30  ;;  %v578_v5 = vrot.slane %v577_v33, 4  ;;  %2159 = vmatpush.bf16.msrb.mxu3 %v2854_v51 }
  0xb2   :  { %v1584_v37 = vsel %vm289_vm7, %v1577_v7, %v1583_v32  ;;  %v565_v50 = vadd.f32 %v564_v31, %v563_v26  ;;  %v572_v41 = vadd.f32 %v571_v45, %v570_v44  ;;  %v585_v59 = vrot.slane %v584_v34, 4 }
  0xb3   :  { %v1585_v40 = vpack.c.b16 %v1584_v37, %v1584_v37  ;;  %v591_v46 = vsel %vm196_vm0, %v545_v6, 0.0  ;;  %v559_v1 = vrot.slane %v558_v35, 2  ;;  %v579_v60 = vadd.f32 %v578_v5, %v577_v33 }
  0xb4   :  { %v566_v49 = vrot.slane %v565_v50, 2  ;;  %v592_v15 = vrot.slane %v591_v46, 4  ;;  %v573_v39 = vrot.slane %v572_v41, 2  ;;  %v586_v57 = vadd.f32 %v585_v59, %v584_v34 }
  0xb5   :  { %1643 = vmatmul.bf16.vlgmr.msra.gmra.mxu2 %v1585_v40  ;;  %v598_v56 = vsel %vm196_vm0, %v546_v23, 0.0  ;;  %v605_v58 = vsel %vm196_vm0, %v547_v25, 0.0  ;;  %v560_v2 = vadd.f32 %v559_v1, %v558_v35  ;;  %v580_v7 = vrot.slane %v579_v60, 2 }
  0xb6   :  { %v567_v12 = vadd.f32 %v566_v49, %v565_v50  ;;  %v593_v62 = vadd.f32 %v592_v15, %v591_v46  ;;  %v574_v53 = vadd.f32 %v573_v39, %v572_v41  ;;  %v587_v13 = vrot.slane %v586_v57, 2 }
  0xb7   :  { %v599_v48 = vrot.slane %v598_v56, 4  ;;  %v606_v52 = vrot.slane %v605_v58, 4  ;;  %v561_v17 = vrot.slane %v560_v2, 1  ;;  %v581_v47 = vadd.f32 %v580_v7, %v579_v60 }
  0xb8   :  { %v568_v22 = vrot.slane %v567_v12, 1  ;;  %v594_v6 = vrot.slane %v593_v62, 2  ;;  %v575_v28 = vrot.slane %v574_v53, 1  ;;  %v588_v30 = vadd.f32 %v587_v13, %v586_v57 }
  0xb9   :  { %v600_v26 = vadd.f32 %v599_v48, %v598_v56  ;;  %v607_v23 = vadd.f32 %v606_v52, %v605_v58  ;;  %v562_v27 = vadd.f32 %v561_v17, %v560_v2  ;;  %v582_v36 = vrot.slane %v581_v47, 1 }
  0xba   :  { %v569_v25 = vadd.f32 %v568_v22, %v567_v12  ;;  %v595_v31 = vadd.f32 %v594_v6, %v593_v62  ;;  %v576_v44 = vadd.f32 %v575_v28, %v574_v53  ;;  %v589_v32 = vrot.slane %v588_v30, 1 }
  0xbb   :  { %v601_v45 = vrot.slane %v600_v26, 2  ;;  %v608_v33 = vrot.slane %v607_v23, 2  ;;  %v583_v34 = vadd.f32 %v582_v36, %v581_v47  ;;  %v612_v35 = vmul.f32 0.5, %v562_v27 }
  0xbc   :  { %v596_v37 = vrot.slane %v595_v31, 1  ;;  %v613_v50 = vmul.f32 0.5, %v569_v25  ;;  %v590_v5 = vadd.f32 %v589_v32, %v588_v30  ;;  %v614_v59 = vmul.f32 0.5, %v576_v44 }
  0xbd   :  { %v602_v40 = vadd.f32 %v601_v45, %v600_v26  ;;  %v609_v41 = vadd.f32 %v608_v33, %v607_v23  ;;  %v615_v1 = vmul.f32 0.5, %v583_v34  ;;  %v620_v49 = vmul.f32 %v612_v35, %v612_v35 }
  0xbe   :  { %v597_v46 = vadd.f32 %v596_v37, %v595_v31  ;;  %v621_v60 = vmul.f32 %v613_v50, %v613_v50  ;;  %v616_v57 = vmul.f32 0.5, %v590_v5  ;;  %v622_v56 = vmul.f32 %v614_v59, %v614_v59 }
  0xbf   :  { %v603_v15 = vrot.slane %v602_v40, 1  ;;  %v610_v39 = vrot.slane %v609_v41, 1  ;;  %v623_v51 = vmul.f32 %v615_v1, %v615_v1  ;;  %v417_v12 = vpack.c.bf16 %v3318_v54, %v3318_v54 }
  0xc0   :  { %v617_v58 = vmul.f32 0.5, %v597_v46  ;;  %v636_v2 = vsel %vm277_vm1, %v621_v60, %v620_v49  ;;  %v624_v53 = vmul.f32 %v616_v57, %v616_v57  ;;  %v418_v17 = vpack.c.bf16 %v3320_v61, %v3320_v61 }
  0xc1   :  { %v604_v7 = vadd.f32 %v603_v15, %v602_v40  ;;  %v611_v62 = vadd.f32 %v610_v39, %v609_v41  ;;  %v637_v13 = vsel %vm279_vm2, %v622_v56, %v636_v2  ;;  %v419_v22 = vpack.c.bf16 %v3322_v55, %v3322_v55 }
  0xc2   :  { %v625_v48 = vmul.f32 %v617_v58, %v617_v58  ;;  %v638_v52 = vsel %vm281_vm3, %v623_v51, %v637_v13  ;;  %v420_v54 = vpack.c.bf16 %v3324_v42, %v3324_v42  ;;  %v421_v26 = vpack.c.bf16 %v3326_v8, %v3326_v8 }
  0xc3   :  { %v618_v47 = vmul.f32 0.5, %v604_v7  ;;  %v619_v6 = vmul.f32 0.5, %v611_v62  ;;  %v639_v28 = vsel %vm283_vm4, %v624_v53, %v638_v52  ;;  %v422_v23 = vpack.c.bf16 %v3330_v21, %v3330_v21 }
  0xc4   :  { %v640_v30 = vsel %vm285_vm5, %v625_v48, %v639_v28  ;;  %v423_v61 = vpack.c.bf16 %v3338_v3, %v3338_v3  ;;  %v424_v25 = vpack.c.bf16 %v3351_v43, %v3351_v43  ;;  %v1381_v36 = vunpack.c.l.b16 %v417_v12 }
  0xc5   :  { %v626_v27 = vmul.f32 %v618_v47, %v618_v47  ;;  %v627_v55 = vmul.f32 %v619_v6, %v619_v6  ;;  %v1382_v31 = vunpack.c.l.b16 %v418_v17  ;;  %v1383_v44 = vunpack.c.l.b16 %v419_v22 }
  0xc6   :  { %v1384_v42 = vunpack.c.l.b16 %v420_v54  ;;  %v1385_v32 = vunpack.c.l.b16 %v421_v26  ;;  %v1386_v33 = vunpack.c.l.b16 %v422_v23  ;;  %v1387_v8 = vunpack.c.l.b16 %v423_v61 }
  0xc7   :  { %v641_v45 = vsel %vm287_vm6, %v626_v27, %v640_v30  ;;  %v1388_v34 = vunpack.c.l.b16 %v424_v25  ;;  %v1389_v37 = vsel %vm277_vm1, %v1382_v31, %v1381_v36  ;;  %v647_v3 = vpack.c.bf16 %v612_v35, %v612_v35 }
  0xc8   :  { %v642_v21 = vsel %vm289_vm7, %v627_v55, %v641_v45  ;;  %v648_v5 = vpack.c.bf16 %v613_v50, %v613_v50  ;;  %v1390_v40 = vsel %vm279_vm2, %v1383_v44, %v1389_v37  ;;  %v649_v43 = vpack.c.bf16 %v614_v59, %v614_v59 }
  0xc9   :  { %644 = vadd.xlane.f32.xlu1 %v642_v21  ;;  %v650_v41 = vpack.c.bf16 %v615_v1, %v615_v1  ;;  %v651_v46 = vpack.c.bf16 %v616_v57, %v616_v57  ;;  %v1391_v49 = vsel %vm281_vm3, %v1384_v42, %v1390_v40  ;;  %v652_v60 = vpack.c.bf16 %v617_v58, %v617_v58  ;;  %v2845_v40 = vld [vmem:[#allocation6 + $0x190] sm:$0xff] }
  0xca   :  { %v653_v15 = vpack.c.bf16 %v618_v47, %v618_v47  ;;  %v654_v39 = vpack.c.bf16 %v619_v6, %v619_v6  ;;  %v1392_v56 = vsel %vm283_vm4, %v1385_v32, %v1391_v49  ;;  %v1674_v51 = vunpack.c.l.b16 %v647_v3  ;;  %2056 = vmatpush.bf16.msrb.mxu2 %v2845_v40 }
  0xcb   :  { %v1675_v2 = vunpack.c.l.b16 %v648_v5  ;;  %v1676_v12 = vunpack.c.l.b16 %v649_v43  ;;  %v1393_v7 = vsel %vm285_vm5, %v1386_v33, %v1392_v56  ;;  %v1677_v35 = vunpack.c.l.b16 %v650_v41 }
  0xcc   :  { %v1678_v50 = vunpack.c.l.b16 %v651_v46  ;;  %v1679_v62 = vunpack.c.l.b16 %v652_v60  ;;  %v1394_v53 = vsel %vm287_vm6, %v1387_v8, %v1393_v7  ;;  %v1680_v59 = vunpack.c.l.b16 %v653_v15  ;;  %v2829_v8 = vld [vmem:[#allocation6 + $0x110] sm:$0xff] }
  0xcd   :  { %v1681_v1 = vunpack.c.l.b16 %v654_v39  ;;  %v1682_v57 = vsel %vm277_vm1, %v1675_v2, %v1674_v51  ;;  %v1395_v58 = vsel %vm289_vm7, %v1388_v34, %v1394_v53  ;;  %v762_v48 = vrot.slane %v3212_v4, 2  ;;  %v2837_v34 = vld [vmem:[#allocation6 + $0x150] sm:$0xff]  ;;  %1848 = vmatpush.bf16.msrb.mxu0 %v2829_v8 }
  0xce   :  { %v1683_v13 = vsel %vm279_vm2, %v1676_v12, %v1682_v57  ;;  %v763_v52 = vrot.slane %v3219_v11, 2  ;;  %v1396_v17 = vpack.c.b16 %v1395_v58, %v1395_v58  ;;  %v764_v47 = vrot.slane %v3226_v16, 2  ;;  %1952 = vmatpush.bf16.msrb.mxu1 %v2837_v34 }
  0xcf   :  { %v1684_v22 = vsel %vm281_vm3, %v1677_v35, %v1683_v13  ;;  %v765_v6 = vrot.slane %v3229_v18, 2  ;;  %v766_v54 = vrot.slane %v3231_v19, 2  ;;  %v767_v30 = vrot.slane %v3233_v20, 2 }
  0xd0   :  { %v1685_v28 = vsel %vm283_vm4, %v1678_v50, %v1684_v22  ;;  %v768_v26 = vrot.slane %v3240_v24, 2  ;;  %1454 = vmatmul.bf16.vlgmr.msra.gmra.mxu0 %v1396_v17  ;;  %v769_v61 = vrot.slane %v3243_v29, 2  ;;  %v778_v27 = vsel %vm196_vm0, %v762_v48, 0.0 }
  0xd1   :  { %v1686_v23 = vsel %vm285_vm5, %v1679_v62, %v1685_v28  ;;  %v785_v55 = vsel %vm196_vm0, %v763_v52, 0.0  ;;  %v779_v36 = vrot.slane %v778_v27, 4  ;;  %v792_v44 = vsel %vm196_vm0, %v764_v47, 0.0 }
  0xd2   :  { %v1687_v25 = vsel %vm287_vm6, %v1680_v59, %v1686_v23  ;;  %v786_v31 = vrot.slane %v785_v55, 4  ;;  %v793_v32 = vrot.slane %v792_v44, 4  ;;  %v799_v45 = vsel %vm196_vm0, %v765_v6, 0.0 }
  0xd3   :  { %v1688_v42 = vsel %vm289_vm7, %v1681_v1, %v1687_v25  ;;  %v806_v33 = vsel %vm196_vm0, %v766_v54, 0.0  ;;  %v780_v37 = vadd.f32 %v779_v36, %v778_v27  ;;  %v800_v5 = vrot.slane %v799_v45, 4 }
  0xd4   :  { %v1689_v21 = vpack.c.b16 %v1688_v42, %v1688_v42  ;;  %v787_v3 = vadd.f32 %v786_v31, %v785_v55  ;;  %v794_v43 = vadd.f32 %v793_v32, %v792_v44  ;;  %v807_v41 = vrot.slane %v806_v33, 4 }
  0xd5   :  { %v813_v46 = vsel %vm196_vm0, %v767_v30, 0.0  ;;  %v820_v49 = vsel %vm196_vm0, %v768_v26, 0.0  ;;  %v781_v60 = vrot.slane %v780_v37, 2  ;;  %v801_v39 = vadd.f32 %v800_v5, %v799_v45 }
  0xd6   :  { %1747 = vmatmul.bf16.vlgmr.msra.gmra.mxu3 %v1689_v21  ;;  %v788_v15 = vrot.slane %v787_v3, 2  ;;  %v814_v56 = vrot.slane %v813_v46, 4  ;;  %v795_v51 = vrot.slane %v794_v43, 2  ;;  %v808_v2 = vadd.f32 %v807_v41, %v806_v33 }
  0xd7   :  { %v821_v12 = vrot.slane %v820_v49, 4  ;;  %v827_v7 = vsel %vm196_vm0, %v769_v61, 0.0  ;;  %v782_v35 = vadd.f32 %v781_v60, %v780_v37  ;;  %v802_v62 = vrot.slane %v801_v39, 2 }
  0xd8   :  { %v789_v50 = vadd.f32 %v788_v15, %v787_v3  ;;  %v815_v53 = vadd.f32 %v814_v56, %v813_v46  ;;  %v796_v59 = vadd.f32 %v795_v51, %v794_v43  ;;  %v809_v1 = vrot.slane %v808_v2, 2 }
  0xd9   :  { %v822_v57 = vadd.f32 %v821_v12, %v820_v49  ;;  %v828_v58 = vrot.slane %v827_v7, 4  ;;  %v783_v13 = vrot.slane %v782_v35, 1  ;;  %v803_v52 = vadd.f32 %v802_v62, %v801_v39 }
  0xda   :  { %v790_v48 = vrot.slane %v789_v50, 1  ;;  %v816_v17 = vrot.slane %v815_v53, 2  ;;  %v797_v22 = vrot.slane %v796_v59, 1  ;;  %v810_v47 = vadd.f32 %v809_v1, %v808_v2 }
  0xdb   :  { %v823_v6 = vrot.slane %v822_v57, 2  ;;  %v829_v28 = vadd.f32 %v828_v58, %v827_v7  ;;  %v784_v54 = vadd.f32 %v783_v13, %v782_v35  ;;  %v804_v26 = vrot.slane %v803_v52, 1 }
  0xdc   :  { %v791_v30 = vadd.f32 %v790_v48, %v789_v50  ;;  %v817_v23 = vadd.f32 %v816_v17, %v815_v53  ;;  %v798_v61 = vadd.f32 %v797_v22, %v796_v59  ;;  %v811_v27 = vrot.slane %v810_v47, 1  ;;  %v4109_v17 = vld [vmem:[#allocation20_spill] sm:$0xff] }
  0xdd   :  { %v824_v55 = vadd.f32 %v823_v6, %v822_v57  ;;  %v830_v25 = vrot.slane %v829_v28, 2  ;;  %v805_v36 = vadd.f32 %v804_v26, %v803_v52  ;;  %v3449_v44 = vmul.f32 0.5, %v784_v54 }
  0xde   :  { %v818_v31 = vrot.slane %v817_v23, 1  ;;  %v3451_v42 = vmul.f32 0.5, %v791_v30  ;;  %v812_v32 = vadd.f32 %v811_v27, %v810_v47  ;;  %v3453_v8 = vmul.f32 0.5, %v798_v61  ;;  %v4110_v47 = vld [vmem:[#allocation21_spill] sm:$0xff]  ;;  %v4112_v30 = vld [vmem:[#allocation23_spill] sm:$0xff] }
  0xdf   :  { %4101 = vst [vmem:[#allocation30_spill] sm:$0xff] %v3449_v44  ;;  %v825_v45 = vrot.slane %v824_v55, 1  ;;  %v831_v33 = vadd.f32 %v830_v25, %v829_v28  ;;  %v3455_v21 = vmul.f32 0.5, %v805_v36  ;;  %v842_v37 = vmul.f32 %v3449_v44, %v3449_v44  ;;  %v4111_v28 = vld [vmem:[#allocation22_spill] sm:$0xff] }
  0xe0   :  { %4102 = vst [vmem:[#allocation31_spill] sm:$0xff] %v3451_v42  ;;  %v819_v34 = vadd.f32 %v818_v31, %v817_v23  ;;  %v843_v3 = vmul.f32 %v3451_v42, %v3451_v42  ;;  %v3461_v43 = vmul.f32 0.5, %v812_v32  ;;  %v844_v41 = vmul.f32 %v3453_v8, %v3453_v8  ;;  %v4113_v23 = vld [vmem:[#allocation24_spill] sm:$0xff]  ;;  %v4115_v36 = vld [vmem:[#allocation26_spill] sm:$0xff]  ;;  %v4116_v32 = vld [vmem:[#allocation27_spill] sm:$0xff] }
  0xe1   :  { %4103 = vst [vmem:[#allocation32_spill] sm:$0xff] %v3453_v8  ;;  %v826_v5 = vadd.f32 %v825_v45, %v824_v55  ;;  %v832_v40 = vrot.slane %v831_v33, 1  ;;  %v845_v49 = vmul.f32 %v3455_v21, %v3455_v21  ;;  %v294_v22 = vpack.c.bf16 %v4109_v17, %v4109_v17  ;;  %v4114_v55 = vld [vmem:[#allocation25_spill] sm:$0xff] }
  0xe2   :  { %4104 = vst [vmem:[#allocation33_spill] sm:$0xff] %v3455_v21  ;;  %v3465_v46 = vmul.f32 0.5, %v819_v34  ;;  %v858_v60 = vsel %vm277_vm1, %v843_v3, %v842_v37  ;;  %v846_v56 = vmul.f32 %v3461_v43, %v3461_v43  ;;  %v295_v6 = vpack.c.bf16 %v4110_v47, %v4110_v47  ;;  %v2828_v34 = vld [vmem:[#allocation6 + $0x108] sm:$0xff] }
  0xe3   :  { %4105 = vst [vmem:[#allocation34_spill] sm:$0xff] %v3461_v43  ;;  %v833_v15 = vadd.f32 %v832_v40, %v831_v33  ;;  %v3470_v39 = vmul.f32 0.5, %v826_v5  ;;  %v859_v51 = vsel %vm279_vm2, %v844_v41, %v858_v60  ;;  %v296_v54 = vpack.c.bf16 %v4111_v28, %v4111_v28  ;;  %v2853_v33 = vld [vmem:[#allocation6 + $0x1d0] sm:$0xff]  ;;  %v2836_v37 = vld [vmem:[#allocation6 + $0x148] sm:$0xff]  ;;  %1849 = vmatpush.bf16.msrb.mxu0 %v2828_v34 }
  0xe4   :  { %4106 = vst [vmem:[#allocation35_spill] sm:$0xff] %v3465_v46  ;;  %v847_v12 = vmul.f32 %v3465_v46, %v3465_v46  ;;  %v860_v7 = vsel %vm281_vm3, %v845_v49, %v859_v51  ;;  %v297_v26 = vpack.c.bf16 %v4112_v30, %v4112_v30  ;;  %v298_v61 = vpack.c.bf16 %v4113_v23, %v4113_v23  ;;  %v2844_v49 = vld [vmem:[#allocation6 + $0x188] sm:$0xff] }
  0xe5   :  { %4107 = vst [vmem:[#allocation36_spill] sm:$0xff] %v3470_v39  ;;  %v3482_v50 = vmul.f32 0.5, %v833_v15  ;;  %v848_v62 = vmul.f32 %v3470_v39, %v3470_v39  ;;  %v861_v53 = vsel %vm283_vm4, %v846_v56, %v860_v7  ;;  %v299_v25 = vpack.c.bf16 %v4114_v55, %v4114_v55  ;;  %2160 = vmatpush.bf16.msrb.mxu3 %v2853_v33 }
  0xe6   :  { %v862_v58 = vsel %vm285_vm5, %v847_v12, %v861_v53  ;;  %v300_v31 = vpack.c.bf16 %v4115_v36, %v4115_v36  ;;  %v301_v45 = vpack.c.bf16 %v4116_v32, %v4116_v32  ;;  %v1467_v3 = vunpack.c.l.b16 %v294_v22  ;;  %1953 = vmatpush.bf16.msrb.mxu1 %v2836_v37  ;;  %2057 = vmatpush.bf16.msrb.mxu2 %v2844_v49 }
  0xe7   :  { %4108 = vst [vmem:[#allocation37_spill] sm:$0xff] %v3482_v50  ;;  %v849_v48 = vmul.f32 %v3482_v50, %v3482_v50  ;;  %v863_v52 = vsel %vm287_vm6, %v848_v62, %v862_v58  ;;  %v1468_v5 = vunpack.c.l.b16 %v295_v6  ;;  %v1469_v40 = vunpack.c.l.b16 %v296_v54 }
  0xe8   :  { %v1470_v41 = vunpack.c.l.b16 %v297_v26  ;;  %v1471_v60 = vunpack.c.l.b16 %v298_v61  ;;  %v1472_v15 = vunpack.c.l.b16 %v299_v25  ;;  %v1473_v56 = vunpack.c.l.b16 %v300_v31 }
  0xe9   :  { %v864_v27 = vsel %vm289_vm7, %v849_v48, %v863_v52  ;;  %v1474_v51 = vunpack.c.l.b16 %v301_v45  ;;  %v1475_v12 = vsel %vm277_vm1, %v1468_v5, %v1467_v3  ;;  %v877_v7 = vrot.slane %v3212_v4, 4 }
  0xea   :  { %866 = vadd.xlane.f32.xlu2 %v864_v27  ;;  %v878_v62 = vrot.slane %v3219_v11, 4  ;;  %v879_v53 = vrot.slane %v3226_v16, 4  ;;  %v1476_v58 = vsel %vm279_vm2, %v1469_v40, %v1475_v12  ;;  %v880_v48 = vrot.slane %v3229_v18, 4 }
  0xeb   :  { %v881_v52 = vrot.slane %v3231_v19, 4  ;;  %v882_v17 = vrot.slane %v3233_v20, 4  ;;  %v1477_v22 = vsel %vm281_vm3, %v1470_v41, %v1476_v58  ;;  %v883_v47 = vrot.slane %v3240_v24, 4 }
  0xec   :  { %v884_v6 = vrot.slane %v3243_v29, 4  ;;  %v893_v28 = vsel %vm196_vm0, %v877_v7, 0.0  ;;  %v1478_v54 = vsel %vm283_vm4, %v1471_v60, %v1477_v22  ;;  %v900_v26 = vsel %vm196_vm0, %v878_v62, 0.0 }
  0xed   :  { %v894_v30 = vrot.slane %v893_v28, 4  ;;  %v907_v23 = vsel %vm196_vm0, %v879_v53, 0.0  ;;  %v1479_v61 = vsel %vm285_vm5, %v1472_v15, %v1478_v54  ;;  %v901_v27 = vrot.slane %v900_v26, 4 }
  0xee   :  { %v908_v55 = vrot.slane %v907_v23, 4  ;;  %v914_v25 = vsel %vm196_vm0, %v880_v48, 0.0  ;;  %v1480_v36 = vsel %vm287_vm6, %v1473_v56, %v1479_v61  ;;  %v921_v45 = vsel %vm196_vm0, %v881_v52, 0.0 }
  0xef   :  { %v895_v31 = vadd.f32 %v894_v30, %v893_v28  ;;  %v915_v32 = vrot.slane %v914_v25, 4  ;;  %v1481_v33 = vsel %vm289_vm7, %v1474_v51, %v1480_v36  ;;  %v902_v34 = vadd.f32 %v901_v27, %v900_v26 }
  0xf0   :  { %v909_v37 = vadd.f32 %v908_v55, %v907_v23  ;;  %v922_v3 = vrot.slane %v921_v45, 4  ;;  %v1482_v5 = vpack.c.b16 %v1481_v33, %v1481_v33  ;;  %v928_v49 = vsel %vm196_vm0, %v882_v17, 0.0 }
  0xf1   :  { %v896_v40 = vrot.slane %v895_v31, 2  ;;  %v916_v41 = vadd.f32 %v915_v32, %v914_v25  ;;  %v903_v60 = vrot.slane %v902_v34, 2  ;;  %v929_v7 = vrot.slane %v928_v49, 4 }
  0xf2   :  { %v910_v15 = vrot.slane %v909_v37, 2  ;;  %v923_v12 = vadd.f32 %v922_v3, %v921_v45  ;;  %1540 = vmatmul.bf16.vlgmr.msra.gmra.mxu1 %v1482_v5  ;;  %v935_v53 = vsel %vm196_vm0, %v883_v47, 0.0  ;;  %v942_v58 = vsel %vm196_vm0, %v884_v6, 0.0 }
  0xf3   :  { %v897_v56 = vadd.f32 %v896_v40, %v895_v31  ;;  %v917_v62 = vrot.slane %v916_v41, 2  ;;  %v904_v51 = vadd.f32 %v903_v60, %v902_v34  ;;  %v930_v22 = vadd.f32 %v929_v7, %v928_v49 }
  0xf4   :  { %v911_v48 = vadd.f32 %v910_v15, %v909_v37  ;;  %v924_v52 = vrot.slane %v923_v12, 2  ;;  %v936_v30 = vrot.slane %v935_v53, 4  ;;  %v943_v26 = vrot.slane %v942_v58, 4 }
  0xf5   :  { %v898_v28 = vrot.slane %v897_v56, 1  ;;  %v918_v54 = vadd.f32 %v917_v62, %v916_v41  ;;  %v905_v17 = vrot.slane %v904_v51, 1  ;;  %v931_v27 = vrot.slane %v930_v22, 2 }
  0xf6   :  { %v912_v23 = vrot.slane %v911_v48, 1  ;;  %v925_v61 = vadd.f32 %v924_v52, %v923_v12  ;;  %v937_v36 = vadd.f32 %v936_v30, %v935_v53  ;;  %v944_v31 = vadd.f32 %v943_v26, %v942_v58 }
  0xf7   :  { %v899_v55 = vadd.f32 %v898_v28, %v897_v56  ;;  %v919_v25 = vrot.slane %v918_v54, 1  ;;  %v906_v32 = vadd.f32 %v905_v17, %v904_v51  ;;  %v932_v6 = vadd.f32 %v931_v27, %v930_v22 }
  0xf8   :  { %v913_v47 = vadd.f32 %v912_v23, %v911_v48  ;;  %v926_v45 = vrot.slane %v925_v61, 1  ;;  %v938_v34 = vrot.slane %v937_v36, 2  ;;  %v945_v37 = vrot.slane %v944_v31, 2 }
  0xf9   :  { %v920_v33 = vadd.f32 %v919_v25, %v918_v54  ;;  %v3539_v3 = vmul.f32 0.5, %v899_v55  ;;  %v933_v40 = vrot.slane %v932_v6, 1  ;;  %v3541_v41 = vmul.f32 0.5, %v906_v32  ;;  %v2852_v54 = vld [vmem:[#allocation6 + $0x1c8] sm:$0xff] }
  0xfa   :  { %v927_v5 = vadd.f32 %v926_v45, %v925_v61  ;;  %v3543_v49 = vmul.f32 0.5, %v913_v47  ;;  %v939_v60 = vadd.f32 %v938_v34, %v937_v36  ;;  %v946_v15 = vadd.f32 %v945_v37, %v944_v31  ;;  %2161 = vmatpush.bf16.msrb.mxu3 %v2852_v54 }
  0xfb   :  { %v3545_v12 = vmul.f32 0.5, %v920_v33  ;;  %v957_v7 = vmul.f32 %v3539_v3, %v3539_v3  ;;  %v934_v56 = vadd.f32 %v933_v40, %v932_v6  ;;  %v958_v53 = vmul.f32 %v3541_v41, %v3541_v41 }
  0xfc   :  { %v3549_v62 = vmul.f32 0.5, %v927_v5  ;;  %v959_v58 = vmul.f32 %v3543_v49, %v3543_v49  ;;  %v940_v52 = vrot.slane %v939_v60, 1  ;;  %v947_v22 = vrot.slane %v946_v15, 1 }
  0xfd   :  { %v960_v28 = vmul.f32 %v3545_v12, %v3545_v12  ;;  %v3561_v17 = vmul.f32 0.5, %v934_v56  ;;  %v973_v61 = vsel %vm277_vm1, %v958_v53, %v957_v7  ;;  %v992_v40 = vrot.slane %v3212_v4, 6 }
  0xfe   :  { %v961_v23 = vmul.f32 %v3549_v62, %v3549_v62  ;;  %v941_v55 = vadd.f32 %v940_v52, %v939_v60  ;;  %v948_v25 = vadd.f32 %v947_v22, %v946_v15  ;;  %v974_v36 = vsel %vm279_vm2, %v959_v58, %v973_v61 }
  0xff   :  { %v962_v47 = vmul.f32 %v3561_v17, %v3561_v17  ;;  %v975_v45 = vsel %vm281_vm3, %v960_v28, %v974_v36  ;;  %v993_v60 = vrot.slane %v3219_v11, 6  ;;  %v994_v15 = vrot.slane %v3226_v16, 6 }
 0x100   :  { %v3578_v33 = vmul.f32 0.5, %v941_v55  ;;  %v3580_v34 = vmul.f32 0.5, %v948_v25  ;;  %v976_v37 = vsel %vm283_vm4, %v961_v23, %v975_v45  ;;  %v995_v52 = vrot.slane %v3229_v18, 6 }
 0x101   :  { %v977_v5 = vsel %vm285_vm5, %v962_v47, %v976_v37  ;;  %v996_v4 = vrot.slane %v3231_v19, 6  ;;  %v997_v11 = vrot.slane %v3233_v20, 6  ;;  %v998_v16 = vrot.slane %v3240_v24, 6 }
 0x102   :  { %v963_v53 = vmul.f32 %v3578_v33, %v3578_v33  ;;  %v964_v58 = vmul.f32 %v3580_v34, %v3580_v34  ;;  %v999_v28 = vrot.slane %v3243_v29, 6  ;;  %v1008_v54 = vsel %vm196_vm0, %v992_v40, 0.0 }
 0x103   :  { %v1015_v23 = vsel %vm196_vm0, %v993_v60, 0.0  ;;  %v1009_v55 = vrot.slane %v1008_v54, 4  ;;  %v1022_v18 = vsel %vm196_vm0, %v994_v15, 0.0  ;;  %v1029_v20 = vsel %vm196_vm0, %v995_v52, 0.0 }
 0x104   :  { %v978_v22 = vsel %vm287_vm6, %v963_v53, %v977_v5  ;;  %v1016_v25 = vrot.slane %v1015_v23, 4  ;;  %v1023_v19 = vrot.slane %v1022_v18, 4  ;;  %v1036_v24 = vsel %vm196_vm0, %v996_v4, 0.0 }
 0x105   :  { %v979_v61 = vsel %vm289_vm7, %v964_v58, %v978_v22  ;;  %v1043_v36 = vsel %vm196_vm0, %v997_v11, 0.0  ;;  %v1010_v47 = vadd.f32 %v1009_v55, %v1008_v54  ;;  %v1030_v45 = vrot.slane %v1029_v20, 4 }
 0x106   :  { %981 = vadd.xlane.f32.xlu0 %v979_v61  ;;  %v1017_v29 = vadd.f32 %v1016_v25, %v1015_v23  ;;  %v1037_v37 = vrot.slane %v1036_v24, 4  ;;  %v1024_v5 = vadd.f32 %v1023_v19, %v1022_v18  ;;  %v1044_v40 = vrot.slane %v1043_v36, 4 }
 0x107   :  { %v1050_v60 = vsel %vm196_vm0, %v998_v16, 0.0  ;;  %v1057_v53 = vsel %vm196_vm0, %v999_v28, 0.0  ;;  %v1011_v58 = vrot.slane %v1010_v47, 2  ;;  %v1031_v22 = vadd.f32 %v1030_v45, %v1029_v20 }
 0x108   :  { %v1018_v15 = vrot.slane %v1017_v29, 2  ;;  %v1038_v61 = vadd.f32 %v1037_v37, %v1036_v24  ;;  %v1025_v56 = vrot.slane %v1024_v5, 2  ;;  %v1045_v52 = vadd.f32 %v1044_v40, %v1043_v36 }
 0x109   :  { %v1051_v7 = vrot.slane %v1050_v60, 4  ;;  %v1058_v4 = vrot.slane %v1057_v53, 4  ;;  %v1012_v6 = vadd.f32 %v1011_v58, %v1010_v47  ;;  %v1032_v54 = vrot.slane %v1031_v22, 2 }
 0x10a   :  { %v1019_v11 = vadd.f32 %v1018_v15, %v1017_v29  ;;  %v1039_v23 = vrot.slane %v1038_v61, 2  ;;  %v1026_v55 = vadd.f32 %v1025_v56, %v1024_v5  ;;  %v1046_v25 = vrot.slane %v1045_v52, 2 }
 0x10b   :  { %v1052_v18 = vadd.f32 %v1051_v7, %v1050_v60  ;;  %v1059_v19 = vadd.f32 %v1058_v4, %v1057_v53  ;;  %v1013_v32 = vrot.slane %v1012_v6, 1  ;;  %v1033_v31 = vadd.f32 %v1032_v54, %v1031_v22 }
 0x10c   :  { %v1020_v16 = vrot.slane %v1019_v11, 1  ;;  %v1040_v28 = vadd.f32 %v1039_v23, %v1038_v61  ;;  %v1027_v27 = vrot.slane %v1026_v55, 1  ;;  %v1047_v26 = vadd.f32 %v1046_v25, %v1045_v52  ;;  %v2843_v25 = vld [vmem:[#allocation6 + $0x180] sm:$0xff] }
 0x10d   :  { %v1053_v20 = vrot.slane %v1052_v18, 2  ;;  %v1060_v24 = vrot.slane %v1059_v19, 2  ;;  %v1014_v45 = vadd.f32 %v1013_v32, %v1012_v6  ;;  %v1034_v37 = vrot.slane %v1033_v31, 1  ;;  %v2827_v6 = vld [vmem:[#allocation6 + $0x100] sm:$0xff]  ;;  %2058 = vmatpush.bf16.msrb.mxu2 %v2843_v25 }
 0x10e   :  { %v1021_v36 = vadd.f32 %v1020_v16, %v1019_v11  ;;  %v1041_v40 = vrot.slane %v1040_v28, 1  ;;  %v1028_v47 = vadd.f32 %v1027_v27, %v1026_v55  ;;  %v1048_v29 = vrot.slane %v1047_v26, 1  ;;  %v2835_v11 = vld [vmem:[#allocation6 + $0x140] sm:$0xff]  ;;  %1850 = vmatpush.bf16.msrb.mxu0 %v2827_v6  ;;  %v3662_v6 = vld [vmem:[#allocation2 + $0x58] sm:$0xf] }
 0x10f   :  { %v1054_v58 = vadd.f32 %v1053_v20, %v1052_v18  ;;  %v1061_v15 = vadd.f32 %v1060_v24, %v1059_v19  ;;  %v1035_v56 = vadd.f32 %v1034_v37, %v1033_v31  ;;  %v3610_v7 = vmul.f32 0.5, %v1014_v45  ;;  %v2866_v18 = vld [vmem:[#allocation6 + $0x238] sm:$0xff]  ;;  %1954 = vmatpush.bf16.msrb.mxu1 %v2835_v11  ;;  %v3664_v11 = vld [vmem:[#allocation2 + $0x70] sm:$0xf] }
 0x110   :  { %v1042_v5 = vadd.f32 %v1041_v40, %v1040_v28  ;;  %v3612_v60 = vmul.f32 0.5, %v1021_v36  ;;  %v1049_v53 = vadd.f32 %v1048_v29, %v1047_v26  ;;  %v3614_v52 = vmul.f32 0.5, %v1028_v47  ;;  %v2874_v19 = vld [vmem:[#allocation6 + $0x278] sm:$0xff] }
 0x111   :  { %v1055_v22 = vrot.slane %v1054_v58, 1  ;;  %v1062_v61 = vrot.slane %v1061_v15, 1  ;;  %v3616_v4 = vmul.f32 0.5, %v1035_v56  ;;  %v1072_v27 = vmul.f32 %v3610_v7, %v3610_v7  ;;  %v3649_v56 = vld [vmem:[#allocation2 + $0x10] sm:$0xf] }
 0x112   :  { %v3618_v32 = vmul.f32 0.5, %v1042_v5  ;;  %v1073_v31 = vmul.f32 %v3612_v60, %v3612_v60  ;;  %v3624_v55 = vmul.f32 0.5, %v1049_v53  ;;  %v1074_v26 = vmul.f32 %v3614_v52, %v3614_v52  ;;  %v3651_v5 = vld [vmem:[#allocation2 + $0x28] sm:$0xf]  ;;  %v3653_v53 = vld [vmem:[#allocation2 + $0x40] sm:$0xf]  ;;  %2259 = vmatpush.bf16.msra.mxu0 %v2866_v18 }
 0x113   :  { %v1056_v54 = vadd.f32 %v1055_v22, %v1054_v58  ;;  %v1063_v23 = vadd.f32 %v1062_v61, %v1061_v15  ;;  %v1075_v28 = vmul.f32 %v3616_v4, %v3616_v4  ;;  %2363 = vmatpush.bf16.msra.mxu1 %v2874_v19  ;;  %v4069_v19 = vmax.f32 %v3651_v5, 0.0 }
 0x114   :  { %v1076_v20 = vmul.f32 %v3618_v32, %v3618_v32  ;;  %v1088_v24 = vsel %vm277_vm1, %v1073_v31, %v1072_v27  ;;  %v1077_v37 = vmul.f32 %v3624_v55, %v3624_v55  ;;  %v4067_v16 = vmax.f32 %v3662_v6, 0.0 }
 0x115   :  { %v3635_v45 = vmul.f32 0.5, %v1056_v54  ;;  %v3637_v36 = vmul.f32 0.5, %v1063_v23  ;;  %v1089_v40 = vsel %vm279_vm2, %v1074_v26, %v1088_v24  ;;  %v3666_v54 = vld [vmem:[#allocation2 + $0x88] sm:$0xf]  ;;  %v4070_v48 = vmax.f32 %v3664_v11, 0.0 }
 0x116   :  { %v1090_v15 = vsel %vm281_vm3, %v1075_v28, %v1089_v40  ;;  %v3675_v28 = vld [vmem:[#allocation2 + $0xa0] sm:$0xf]  ;;  %v4071_v40 = vmax.f32 %v3649_v56, 0.0 }
 0x117   :  { %v1078_v61 = vmul.f32 %v3635_v45, %v3635_v45  ;;  %v1079_v27 = vmul.f32 %v3637_v36, %v3637_v36  ;;  %v1091_v31 = vsel %vm283_vm4, %v1076_v20, %v1090_v15  ;;  %v3677_v20 = vld [vmem:[#allocation2 + $0xb8] sm:$0xf]  ;;  %v4068_v15 = vmax.f32 %v3653_v53, 0.0 }
 0x118   :  { %v1092_v18 = vsel %vm285_vm5, %v1077_v37, %v1091_v31  ;;  %v4076_v37 = vmax.f32 %v3666_v54, 0.0  ;;  %v4079_v31 = vmax.f32 %v3675_v28, 0.0  ;;  %v4086_v13 = vmax.f32 %v3677_v20, 0.0 }
 0x119   :  { %v1093_v24 = vsel %vm287_vm6, %v1078_v61, %v1092_v18  ;;  %v1107_v61 = vsel %vm196_vm0, %v4071_v40, 0.0  ;;  %v1114_v18 = vsel %vm196_vm0, %v4069_v19, 0.0  ;;  %v1121_v57 = vsel %vm196_vm0, %v4068_v15, 0.0 }
 0x11a   :  { %v1094_v47 = vsel %vm289_vm7, %v1079_v27, %v1093_v24  ;;  %v1108_v27 = vrot.slane %v1107_v61, 4  ;;  %v1115_v24 = vrot.slane %v1114_v18, 4  ;;  %v1122_v1 = vrot.slane %v1121_v57, 4 }
 0x11b   :  { %1096 = vadd.xlane.f32.xlu1 %v1094_v47  ;;  %v1128_v47 = vsel %vm196_vm0, %v4067_v16, 0.0  ;;  %v1135_v35 = vsel %vm196_vm0, %v4070_v48, 0.0  ;;  %v1142_v2 = vsel %vm196_vm0, %v4076_v37, 0.0  ;;  %v1149_v16 = vsel %vm196_vm0, %v4079_v31, 0.0 }
 0x11c   :  { %v1129_v59 = vrot.slane %v1128_v47, 4  ;;  %v1109_v25 = vadd.f32 %v1108_v27, %v1107_v61  ;;  %v1116_v26 = vadd.f32 %v1115_v24, %v1114_v18  ;;  %v1136_v23 = vrot.slane %v1135_v35, 4 }
 0x11d   :  { %v1143_v22 = vrot.slane %v1142_v2, 4  ;;  %v1123_v58 = vadd.f32 %v1122_v1, %v1121_v57  ;;  %v1156_v15 = vsel %vm196_vm0, %v4086_v13, 0.0  ;;  %v1150_v61 = vrot.slane %v1149_v16, 4 }
 0x11e   :  { %v1130_v29 = vadd.f32 %v1129_v59, %v1128_v47  ;;  %v1110_v19 = vrot.slane %v1109_v25, 2  ;;  %v1117_v48 = vrot.slane %v1116_v26, 2  ;;  %v1137_v40 = vadd.f32 %v1136_v23, %v1135_v35 }
 0x11f   :  { %v1144_v50 = vadd.f32 %v1143_v22, %v1142_v2  ;;  %v1124_v39 = vrot.slane %v1123_v58, 2  ;;  %v1157_v18 = vrot.slane %v1156_v15, 4  ;;  %v1151_v46 = vadd.f32 %v1150_v61, %v1149_v16 }
 0x120   :  { %v1131_v37 = vrot.slane %v1130_v29, 2  ;;  %v1111_v27 = vadd.f32 %v1110_v19, %v1109_v25  ;;  %v1118_v24 = vadd.f32 %v1117_v48, %v1116_v26  ;;  %v1138_v1 = vrot.slane %v1137_v40, 2 }
 0x121   :  { %v1145_v59 = vrot.slane %v1144_v50, 2  ;;  %v1125_v57 = vadd.f32 %v1124_v39, %v1123_v58  ;;  %v1158_v31 = vadd.f32 %v1157_v18, %v1156_v15  ;;  %v1152_v35 = vrot.slane %v1151_v46, 2 }
 0x122   :  { %v1132_v47 = vadd.f32 %v1131_v37, %v1130_v29  ;;  %v1112_v43 = vrot.slane %v1111_v27, 1  ;;  %v1119_v21 = vrot.slane %v1118_v24, 1  ;;  %v1139_v8 = vadd.f32 %v1138_v1, %v1137_v40 }
 0x123   :  { %v1146_v13 = vadd.f32 %v1145_v59, %v1144_v50  ;;  %v1126_v42 = vrot.slane %v1125_v57, 1  ;;  %v1159_v2 = vrot.slane %v1158_v31, 2  ;;  %v1153_v26 = vadd.f32 %v1152_v35, %v1151_v46 }
 0x124   :  { %v1133_v44 = vrot.slane %v1132_v47, 1  ;;  %v1113_v22 = vadd.f32 %v1112_v43, %v1111_v27  ;;  %v1120_v23 = vadd.f32 %v1119_v21, %v1118_v24  ;;  %v1140_v30 = vrot.slane %v1139_v8, 1 }
 0x125   :  { %v1147_v51 = vrot.slane %v1146_v13, 1  ;;  %v1127_v25 = vadd.f32 %v1126_v42, %v1125_v57  ;;  %v1160_v19 = vadd.f32 %v1159_v2, %v1158_v31  ;;  %v1154_v40 = vrot.slane %v1153_v26, 1  ;;  %v2851_v57 = vld [vmem:[#allocation6 + $0x1c0] sm:$0xff] }
 0x126   :  { %v1134_v48 = vadd.f32 %v1133_v44, %v1132_v47  ;;  %v1141_v39 = vadd.f32 %v1140_v30, %v1139_v8  ;;  %v3713_v16 = vmul.f32 0.5, %v1113_v22  ;;  %v3715_v58 = vmul.f32 0.5, %v1120_v23  ;;  %2162 = vmatpush.bf16.msrb.mxu3 %v2851_v57 }
 0x127   :  { %v1148_v29 = vadd.f32 %v1147_v51, %v1146_v13  ;;  %v1161_v50 = vrot.slane %v1160_v19, 1  ;;  %v3717_v15 = vmul.f32 0.5, %v1127_v25  ;;  %v1155_v8 = vadd.f32 %v1154_v40, %v1153_v26 }
 0x128   :  { %v3719_v37 = vmul.f32 0.5, %v1134_v48  ;;  %v3721_v43 = vmul.f32 0.5, %v1141_v39  ;;  %v1171_v44 = vmul.f32 %v3713_v16, %v3713_v16  ;;  %v1172_v42 = vmul.f32 %v3715_v58, %v3715_v58 }
 0x129   :  { %v3723_v21 = vmul.f32 0.5, %v1148_v29  ;;  %v1162_v46 = vadd.f32 %v1161_v50, %v1160_v19  ;;  %v1173_v13 = vmul.f32 %v3717_v15, %v3717_v15  ;;  %v3742_v24 = vmul.f32 0.5, %v1155_v8 }
 0x12a   :  { %v1174_v51 = vmul.f32 %v3719_v37, %v3719_v37  ;;  %v1175_v31 = vmul.f32 %v3721_v43, %v3721_v43  ;;  %v1187_v18 = vsel %vm277_vm1, %v1172_v42, %v1171_v44  ;;  %v4120_v57 = vmax.f32 %v3651_v5, 0.0 }
 0x12b   :  { %v1176_v61 = vmul.f32 %v3723_v21, %v3723_v21  ;;  %v3744_v1 = vmul.f32 0.5, %v1162_v46  ;;  %v1188_v59 = vsel %vm279_vm2, %v1173_v13, %v1187_v18  ;;  %v1177_v25 = vmul.f32 %v3742_v24, %v3742_v24 }
 0x12c   :  { %v1189_v22 = vsel %vm281_vm3, %v1174_v51, %v1188_v59  ;;  %v4119_v18 = vmax.f32 %v3649_v56, 0.0  ;;  %v4124_v29 = vmax.f32 %v3666_v54, 0.0  ;;  %v4126_v56 = vmax.f32 %v3677_v20, 0.0  ;;  %v2865_v20 = vld [vmem:[#allocation6 + $0x230] sm:$0xff] }
 0x12d   :  { %v1178_v48 = vmul.f32 %v3744_v1, %v3744_v1  ;;  %v1190_v26 = vsel %vm283_vm4, %v1175_v31, %v1189_v22  ;;  %v1215_v22 = vrot.slane %v4120_v57, 2  ;;  %2260 = vmatpush.bf16.msra.mxu0 %v2865_v20 }
 0x12e   :  { %v1191_v40 = vsel %vm285_vm5, %v1176_v61, %v1190_v26  ;;  %v1214_v59 = vrot.slane %v4119_v18, 2  ;;  %v4122_v26 = vmax.f32 %v3662_v6, 0.0  ;;  %v1219_v39 = vrot.slane %v4124_v29, 2 }
 0x12f   :  { %v1192_v44 = vsel %vm287_vm6, %v1177_v25, %v1191_v40  ;;  %v4121_v25 = vmax.f32 %v3653_v53, 0.0  ;;  %v1221_v18 = vrot.slane %v4126_v56, 2  ;;  %v1237_v53 = vsel %vm196_vm0, %v1215_v22, 0.0 }
 0x130   :  { %v1193_v46 = vsel %vm289_vm7, %v1178_v48, %v1192_v44  ;;  %v1217_v40 = vrot.slane %v4122_v26, 2  ;;  %v4123_v44 = vmax.f32 %v3664_v11, 0.0  ;;  %v1230_v5 = vsel %vm196_vm0, %v1214_v59, 0.0 }
 0x131   :  { %1195 = vadd.xlane.f32.xlu2 %v1193_v46  ;;  %v1216_v48 = vrot.slane %v4121_v25, 2  ;;  %v4125_v46 = vmax.f32 %v3675_v28, 0.0  ;;  %v1231_v6 = vrot.slane %v1230_v5, 4  ;;  %v1238_v25 = vrot.slane %v1237_v53, 4 }
 0x132   :  { %v1218_v50 = vrot.slane %v4123_v44, 2  ;;  %v1251_v11 = vsel %vm196_vm0, %v1217_v40, 0.0  ;;  %v1265_v28 = vsel %vm196_vm0, %v1219_v39, 0.0  ;;  %v1279_v47 = vsel %vm196_vm0, %v1221_v18, 0.0 }
 0x133   :  { %v1220_v19 = vrot.slane %v4125_v46, 2  ;;  %v1244_v57 = vsel %vm196_vm0, %v1216_v48, 0.0  ;;  %v1252_v44 = vrot.slane %v1251_v11, 4  ;;  %v2873_v46 = vld [vmem:[#allocation6 + $0x270] sm:$0xff]  ;;  %v1232_v56 = vadd.f32 %v1231_v6, %v1230_v5 }
 0x134   :  { %v1245_v26 = vrot.slane %v1244_v57, 4  ;;  %v1258_v54 = vsel %vm196_vm0, %v1218_v50, 0.0  ;;  %v1239_v59 = vadd.f32 %v1238_v25, %v1237_v53  ;;  %v1266_v48 = vrot.slane %v1265_v28, 4  ;;  %2364 = vmatpush.bf16.msra.mxu1 %v2873_v46 }
 0x135   :  { %v1272_v29 = vsel %vm196_vm0, %v1220_v19, 0.0  ;;  %v1259_v22 = vrot.slane %v1258_v54, 4  ;;  %v1253_v2 = vadd.f32 %v1252_v44, %v1251_v11  ;;  %v1233_v40 = vrot.slane %v1232_v56, 2 }
 0x136   :  { %v1246_v23 = vadd.f32 %v1245_v26, %v1244_v57  ;;  %v1273_v35 = vrot.slane %v1272_v29, 4  ;;  %v1240_v27 = vrot.slane %v1239_v59, 2  ;;  %v1267_v61 = vadd.f32 %v1266_v48, %v1265_v28 }
 0x137   :  { %v1260_v30 = vadd.f32 %v1259_v22, %v1258_v54  ;;  %v1254_v39 = vrot.slane %v1253_v2, 2  ;;  %v1280_v31 = vrot.slane %v1279_v47, 4  ;;  %v1234_v51 = vadd.f32 %v1233_v40, %v1232_v56 }
 0x138   :  { %v1247_v50 = vrot.slane %v1246_v23, 2  ;;  %v1274_v19 = vadd.f32 %v1273_v35, %v1272_v29  ;;  %v1241_v5 = vadd.f32 %v1240_v27, %v1239_v59  ;;  %v1268_v25 = vrot.slane %v1267_v61, 2 }
 0x139   :  { %v1261_v57 = vrot.slane %v1260_v30, 2  ;;  %v1255_v6 = vadd.f32 %v1254_v39, %v1253_v2  ;;  %v1281_v11 = vadd.f32 %v1280_v31, %v1279_v47  ;;  %v1235_v44 = vrot.slane %v1234_v51, 1  ;;  %v2864_v31 = vld [vmem:[#allocation6 + $0x228] sm:$0xff] }
 0x13a   :  { %v1248_v53 = vadd.f32 %v1247_v50, %v1246_v23  ;;  %v1275_v26 = vrot.slane %v1274_v19, 2  ;;  %v1242_v18 = vrot.slane %v1241_v5, 1  ;;  %v1269_v8 = vadd.f32 %v1268_v25, %v1267_v61  ;;  %v2872_v50 = vld [vmem:[#allocation6 + $0x268] sm:$0xff]  ;;  %2261 = vmatpush.bf16.msra.mxu0 %v2864_v31 }
 0x13b   :  { %v1262_v46 = vadd.f32 %v1261_v57, %v1260_v30  ;;  %v1256_v13 = vrot.slane %v1255_v6, 1  ;;  %v1282_v54 = vrot.slane %v1281_v11, 2  ;;  %v1236_v22 = vadd.f32 %v1235_v44, %v1234_v51  ;;  %2365 = vmatpush.bf16.msra.mxu1 %v2872_v50 }
 0x13c   :  { %v1249_v20 = vrot.slane %v1248_v53, 1  ;;  %v1276_v42 = vadd.f32 %v1275_v26, %v1274_v19  ;;  %v1243_v28 = vadd.f32 %v1242_v18, %v1241_v5  ;;  %v1270_v27 = vrot.slane %v1269_v8, 1 }
 0x13d   :  { %v1263_v29 = vrot.slane %v1262_v46, 1  ;;  %v1257_v56 = vadd.f32 %v1256_v13, %v1255_v6  ;;  %v1283_v59 = vadd.f32 %v1282_v54, %v1281_v11  ;;  %v1286_v48 = vmul.f32 0.5, %v1236_v22  ;;  %v2863_v13 = vld [vmem:[#allocation6 + $0x220] sm:$0xff] }
 0x13e   :  { %v1250_v35 = vadd.f32 %v1249_v20, %v1248_v53  ;;  %v1277_v23 = vrot.slane %v1276_v42, 1  ;;  %v1287_v40 = vmul.f32 0.5, %v1243_v28  ;;  %v1271_v39 = vadd.f32 %v1270_v27, %v1269_v8  ;;  %2262 = vmatpush.bf16.msra.mxu0 %v2863_v13 }
 0x13f   :  { %v1264_v2 = vadd.f32 %v1263_v29, %v1262_v46  ;;  %v1284_v57 = vrot.slane %v1283_v59, 1  ;;  %v3808_v61 = vmul.f32 0.5, %v1257_v56  ;;  %v1294_v51 = vmul.f32 %v1286_v48, %v1286_v48 }
 0x140   :  { %v1288_v47 = vmul.f32 0.5, %v1250_v35  ;;  %v1278_v30 = vadd.f32 %v1277_v23, %v1276_v42  ;;  %v1295_v5 = vmul.f32 %v1287_v40, %v1287_v40  ;;  %v3812_v25 = vmul.f32 0.5, %v1271_v39  ;;  %v2871_v42 = vld [vmem:[#allocation6 + $0x260] sm:$0xff]  ;;  %v2862_v23 = vld [vmem:[#allocation6 + $0x218] sm:$0xff] }
 0x141   :  { %v3810_v19 = vmul.f32 0.5, %v1264_v2  ;;  %v1285_v6 = vadd.f32 %v1284_v57, %v1283_v59  ;;  %v1297_v8 = vmul.f32 %v3808_v61, %v3808_v61  ;;  %v1204_v11 = vpack.c.bf16 %v3742_v24, %v3742_v24  ;;  %2366 = vmatpush.bf16.msra.mxu1 %v2871_v42 }
 0x142   :  { %v1296_v53 = vmul.f32 %v1288_v47, %v1288_v47  ;;  %v3814_v26 = vmul.f32 0.5, %v1278_v30  ;;  %v1205_v44 = vpack.c.bf16 %v3744_v1, %v3744_v1  ;;  %v1310_v20 = vsel %vm277_vm1, %v1295_v5, %v1294_v51  ;;  %2263 = vmatpush.bf16.msra.mxu0 %v2862_v23 }
 0x143   :  { %v1298_v18 = vmul.f32 %v3810_v19, %v3810_v19  ;;  %v3825_v46 = vmul.f32 0.5, %v1285_v6  ;;  %v1299_v54 = vmul.f32 %v3812_v25, %v3812_v25  ;;  %v4127_v24 = vpack.c.bf16 %v3713_v16, %v3713_v16 }
 0x144   :  { %v1300_v22 = vmul.f32 %v3814_v26, %v3814_v26  ;;  %v1311_v28 = vsel %vm279_vm2, %v1296_v53, %v1310_v20  ;;  %v1321_v56 = vpack.c.bf16 %v1286_v48, %v1286_v48  ;;  %v1322_v27 = vpack.c.bf16 %v1287_v40, %v1287_v40  ;;  %v2870_v48 = vld [vmem:[#allocation6 + $0x258] sm:$0xff] }
 0x145   :  { %v3835_v35 = vunpack.c.l.b16 %v4127_v24  ;;  %v1312_v29 = vsel %vm281_vm3, %v1297_v8, %v1311_v28  ;;  %v4128_v59 = vpack.c.bf16 %v3715_v58, %v3715_v58  ;;  %v4129_v31 = vpack.c.bf16 %v3717_v15, %v3717_v15  ;;  %2367 = vmatpush.bf16.msra.mxu1 %v2870_v48 }
 0x146   :  { %v1301_v16 = vmul.f32 %v3825_v46, %v3825_v46  ;;  %v1313_v39 = vsel %vm283_vm4, %v1298_v18, %v1312_v29  ;;  %v4130_v40 = vpack.c.bf16 %v3719_v37, %v3719_v37  ;;  %v4131_v58 = vpack.c.bf16 %v3721_v43, %v3721_v43 }
 0x147   :  { %v3841_v2 = vunpack.c.l.b16 %v4128_v59  ;;  %v3846_v50 = vunpack.c.l.b16 %v4129_v31  ;;  %v1314_v15 = vsel %vm285_vm5, %v1299_v54, %v1313_v39  ;;  %v1323_v51 = vpack.c.bf16 %v1288_v47, %v1288_v47 }
 0x148   :  { %v3854_v30 = vunpack.c.l.b16 %v4130_v40  ;;  %v3859_v57 = vunpack.c.l.b16 %v4131_v58  ;;  %v4132_v5 = vpack.c.bf16 %v3723_v21, %v3723_v21  ;;  %v3867_v13 = vunpack.c.l.b16 %v1204_v11  ;;  %v2861_v21 = vld [vmem:[#allocation6 + $0x210] sm:$0xff] }
 0x149   :  { %v1315_v6 = vsel %vm287_vm6, %v1300_v22, %v1314_v15  ;;  %v1324_v37 = vpack.c.bf16 %v3808_v61, %v3808_v61  ;;  %v1325_v43 = vpack.c.bf16 %v3810_v19, %v3810_v19  ;;  %v3875_v42 = vunpack.c.l.b16 %v1321_v56  ;;  %v2869_v56 = vld [vmem:[#allocation6 + $0x250] sm:$0xff]  ;;  %2264 = vmatpush.bf16.msra.mxu0 %v2861_v21 }
 0x14a   :  { %v3865_v53 = vunpack.c.l.b16 %v4132_v5  ;;  %v1316_v8 = vsel %vm289_vm7, %v1301_v16, %v1315_v6  ;;  %v3877_v47 = vunpack.c.l.b16 %v1322_v27  ;;  %v4133_v11 = vpack.c.bf16 %v3539_v3, %v3539_v3  ;;  %2368 = vmatpush.bf16.msra.mxu1 %v2869_v56 }
 0x14b   :  { %1318 = vadd.xlane.f32.xlu0 %v1316_v8  ;;  %v4134_v20 = vpack.c.bf16 %v3541_v41, %v3541_v41  ;;  %v4135_v22 = vpack.c.bf16 %v3543_v49, %v3543_v49  ;;  %v4136_v24 = vpack.c.bf16 %v3545_v12, %v3545_v12  ;;  %v3891_v27 = vunpack.c.l.b16 %v1323_v51 }
 0x14c   :  { %v1986_v18 = vunpack.c.l.b16 %v4133_v11  ;;  %v4137_v3 = vpack.c.bf16 %v3549_v62, %v3549_v62  ;;  %v4138_v41 = vpack.c.bf16 %v3561_v17, %v3561_v17  ;;  %v4139_v49 = vpack.c.bf16 %v3578_v33, %v3578_v33 }
 0x14d   :  { %v1987_v54 = vunpack.c.l.b16 %v4134_v20  ;;  %v1988_v28 = vunpack.c.l.b16 %v4135_v22  ;;  %v1989_v29 = vunpack.c.l.b16 %v4136_v24  ;;  %v4140_v12 = vpack.c.bf16 %v3263_v63, %v3263_v63 }
 0x14e   :  { %v1990_v23 = vunpack.c.l.b16 %v4137_v3  ;;  %v1991_v59 = vunpack.c.l.b16 %v4138_v41  ;;  %v1992_v31 = vunpack.c.l.b16 %v4139_v49  ;;  %v4141_v48 = vpack.c.bf16 %v3265_v0, %v3265_v0  ;;  %v2860_v0 = vld [vmem:[#allocation6 + $0x208] sm:$0xff]  ;;  %v4151_v3 = vld [vmem:[#allocation29_spill] sm:$0xff] }
 0x14f   :  { %v1994_v16 = vsel %vm277_vm1, %v1987_v54, %v1986_v18  ;;  %v1778_v39 = vunpack.c.l.b16 %v4140_v12  ;;  %v4142_v62 = vpack.c.bf16 %v3267_v9, %v3267_v9  ;;  %v4143_v17 = vpack.c.bf16 %v3580_v34, %v3580_v34  ;;  %v4147_v34 = vld [vmem:[#allocation28_spill] sm:$0xff]  ;;  %2265 = vmatpush.bf16.msra.mxu0 %v2860_v0 }
 0x150   :  { %v1779_v40 = vunpack.c.l.b16 %v4141_v48  ;;  %v1995_v33 = vsel %vm279_vm2, %v1988_v28, %v1994_v16  ;;  %v4144_v51 = vpack.c.bf16 %v3269_v10, %v3269_v10  ;;  %v4145_v63 = vpack.c.bf16 %v3271_v14, %v3271_v14  ;;  %v2868_v10 = vld [vmem:[#allocation6 + $0x248] sm:$0xff] }
 0x151   :  { %v1780_v58 = vunpack.c.l.b16 %v4142_v62  ;;  %v1993_v15 = vunpack.c.l.b16 %v4143_v17  ;;  %v1996_v8 = vsel %vm281_vm3, %v1989_v29, %v1995_v33  ;;  %v4146_v9 = vpack.c.bf16 %v3284_v38, %v3284_v38  ;;  %2369 = vmatpush.bf16.msra.mxu1 %v2868_v10 }
 0x152   :  { %v1781_v5 = vunpack.c.l.b16 %v4144_v51  ;;  %v1782_v6 = vunpack.c.l.b16 %v4145_v63  ;;  %v4148_v18 = vpack.c.bf16 %v4147_v34, %v4147_v34  ;;  %v1786_v54 = vsel %vm277_vm1, %v1779_v40, %v1778_v39  ;;  %v2859_v40 = vld [vmem:[#allocation6 + $0x200] sm:$0xff]  ;;  %v4158_v63 = vld [vmem:[#allocation30_spill] sm:$0xff] }
 0x153   :  { %v1783_v11 = vunpack.c.l.b16 %v4146_v9  ;;  %v1997_v22 = vsel %vm283_vm4, %v1990_v23, %v1996_v8  ;;  %v1787_v14 = vsel %vm279_vm2, %v1780_v58, %v1786_v54  ;;  %v4149_v21 = vpack.c.bf16 %v3610_v7, %v3610_v7  ;;  %v4160_v8 = vld [vmem:[#allocation31_spill] sm:$0xff]  ;;  %2266 = vmatpush.bf16.msra.mxu0 %v2859_v40 }
 0x154   :  { %v1784_v20 = vunpack.c.l.b16 %v4148_v18  ;;  %v4150_v38 = vpack.c.bf16 %v3612_v60, %v3612_v60  ;;  %v1998_v29 = vsel %vm285_vm5, %v1991_v59, %v1997_v22  ;;  %v4152_v41 = vpack.c.bf16 %v4151_v3, %v4151_v3 }
 0x155   :  { %v2090_v28 = vunpack.c.l.b16 %v4149_v21  ;;  %v1788_v56 = vsel %vm281_vm3, %v1781_v5, %v1787_v14  ;;  %v4153_v23 = vpack.c.bf16 %v3614_v52, %v3614_v52  ;;  %v1999_v12 = vsel %vm287_vm6, %v1992_v31, %v1998_v29  ;;  %v4165_v14 = vld [vmem:[#allocation33_spill] sm:$0xff]  ;;  %v4167_v29 = vld [vmem:[#allocation34_spill] sm:$0xff] }
 0x156   :  { %v2091_v24 = vunpack.c.l.b16 %v4150_v38  ;;  %v1785_v49 = vunpack.c.l.b16 %v4152_v41  ;;  %v1789_v7 = vsel %vm283_vm4, %v1782_v6, %v1788_v56  ;;  %v4154_v60 = vpack.c.bf16 %v3616_v4, %v3616_v4  ;;  %v2867_v4 = vld [vmem:[#allocation6 + $0x240] sm:$0xff] }
 0x157   :  { %v2092_v16 = vunpack.c.l.b16 %v4153_v23  ;;  %v4155_v59 = vpack.c.bf16 %v3618_v32, %v3618_v32  ;;  %v2000_v62 = vsel %vm289_vm7, %v1993_v15, %v1999_v12  ;;  %v1790_v58 = vsel %vm285_vm5, %v1783_v11, %v1789_v7  ;;  %v4162_v11 = vld [vmem:[#allocation32_spill] sm:$0xff]  ;;  %2370 = vmatpush.bf16.msra.mxu1 %v2867_v4 }
 0x158   :  { %v2093_v39 = vunpack.c.l.b16 %v4154_v60  ;;  %v4156_v52 = vpack.c.bf16 %v3624_v55, %v3624_v55  ;;  %v4157_v17 = vpack.c.bf16 %v3635_v45, %v3635_v45  ;;  %v2001_v51 = vpack.c.b16 %v2000_v62, %v2000_v62  ;;  %v4171_v7 = vld [vmem:[#allocation36_spill] sm:$0xff]  ;;  %v4173_v62 = vld [vmem:[#allocation37_spill] sm:$0xff] }
 0x159   :  { %v2094_v48 = vunpack.c.l.b16 %v4155_v59  ;;  %v1791_v32 = vsel %vm287_vm6, %v1784_v20, %v1790_v58  ;;  %v2098_v5 = vsel %vm277_vm1, %v2091_v24, %v2090_v28  ;;  %v4159_v15 = vpack.c.bf16 %v4158_v63, %v4158_v63 }
 0x15a   :  { %v2095_v31 = vunpack.c.l.b16 %v4156_v52  ;;  %v2096_v33 = vunpack.c.l.b16 %v4157_v17  ;;  %v1792_v0 = vsel %vm289_vm7, %v1785_v49, %v1791_v32  ;;  %v2099_v55 = vsel %vm279_vm2, %v2092_v16, %v2098_v5  ;;  %2059 = vmatmul.bf16.vlgmr.msrb.gmra.mxu2 %v2001_v51  ;;  %v4169_v49 = vld [vmem:[#allocation35_spill] sm:$0xff] }
 0x15b   :  { %v1882_v6 = vunpack.c.l.b16 %v4159_v15  ;;  %v4161_v9 = vpack.c.bf16 %v4160_v8, %v4160_v8  ;;  %v4163_v34 = vpack.c.bf16 %v4162_v11, %v4162_v11  ;;  %v1793_v20 = vpack.c.b16 %v1792_v0, %v1792_v0  ;;  %v1455_v8 = vpop.f32.mrf.mxu0  ;;  %v530_v11 = vpop.xlane.xlu1 %529 }
 0x15c   :  { %v4164_v54 = vpack.c.bf16 %v3637_v36, %v3637_v36  ;;  %v2100_v22 = vsel %vm281_vm3, %v2093_v39, %v2099_v55  ;;  %v4166_v21 = vpack.c.bf16 %v4165_v14, %v4165_v14  ;;  %v2301_v38 = vunpack.c.l.b16 %v1324_v37  ;;  %v1748_v14 = vpop.f32.mrf.mxu3 }
 0x15d   :  { %v1883_v45 = vunpack.c.l.b16 %v4161_v9  ;;  %v1884_v18 = vunpack.c.l.b16 %v4163_v34  ;;  %v2101_v24 = vsel %vm283_vm4, %v2094_v48, %v2100_v22  ;;  %v4168_v3 = vpack.c.bf16 %v4167_v29, %v4167_v29  ;;  %1851 = vmatmul.bf16.vlgmr.msrb.gmra.mxu0 %v1793_v20  ;;  %v1644_v22 = vpop.f32.mrf.mxu2 }
 0x15e   :  { %v2097_v10 = vunpack.c.l.b16 %v4164_v54  ;;  %v1885_v28 = vunpack.c.l.b16 %v4166_v21  ;;  %v4170_v36 = vpack.c.bf16 %v4169_v49, %v4169_v49  ;;  %v2102_v23 = vsel %vm285_vm5, %v2095_v31, %v2101_v24 }
 0x15f   :  { %v1886_v41 = vunpack.c.l.b16 %v4168_v3  ;;  %v1890_v16 = vsel %vm277_vm1, %v1883_v45, %v1882_v6  ;;  %v2202_v61 = vsel %vm277_vm1, %v3841_v2, %v3835_v35  ;;  %v2306_v37 = vsel %vm277_vm1, %v3877_v47, %v3875_v42  ;;  %v293_v45 = vpop.xlane.xlu0 %292 }
 0x160   :  { %v1887_v56 = vunpack.c.l.b16 %v4170_v36  ;;  %v2103_v12 = vsel %vm287_vm6, %v2096_v33, %v2102_v23  ;;  %v4172_v60 = vpack.c.bf16 %v4171_v7, %v4171_v7  ;;  %v1891_v59 = vsel %vm279_vm2, %v1884_v18, %v1890_v16 }
 0x161   :  { %v2203_v48 = vsel %vm279_vm2, %v3846_v50, %v2202_v61  ;;  %v2104_v40 = vsel %vm289_vm7, %v2097_v10, %v2103_v12  ;;  %v4174_v35 = vpack.c.bf16 %v4173_v62, %v4173_v62  ;;  %v1892_v58 = vsel %vm281_vm3, %v1885_v28, %v1891_v59 }
 0x162   :  { %v1888_v39 = vunpack.c.l.b16 %v4172_v60  ;;  %v2204_v42 = vsel %vm281_vm3, %v3854_v30, %v2203_v48  ;;  %v2105_v47 = vpack.c.b16 %v2104_v40, %v2104_v40  ;;  %v1893_v52 = vsel %vm283_vm4, %v1886_v41, %v1892_v58 }
 0x163   :  { %v1889_v2 = vunpack.c.l.b16 %v4174_v35  ;;  %v2205_v31 = vsel %vm283_vm4, %v3859_v57, %v2204_v42  ;;  %v2307_v50 = vsel %vm279_vm2, %v3891_v27, %v2306_v37  ;;  %v1326_v17 = vpack.c.bf16 %v3812_v25, %v3812_v25  ;;  %v1457_v9 = vpop.f32.mrf.mxu0  ;;  %v645_v54 = vpop.xlane.xlu1 %644 }
 0x164   :  { %v1894_v33 = vsel %vm285_vm5, %v1887_v56, %v1893_v52  ;;  %v2206_v4 = vsel %vm285_vm5, %v3865_v53, %v2205_v31  ;;  %v2201_v30 = vunpack.c.l.b16 %v1205_v44  ;;  %v2302_v51 = vunpack.c.l.b16 %v1325_v43  ;;  %2163 = vmatmul.bf16.vlgmr.msrb.gmra.mxu3 %v2105_v47  ;;  %v1750_v29 = vpop.f32.mrf.mxu3 }
 0x165   :  { %v1895_v57 = vsel %vm287_vm6, %v1888_v39, %v1894_v33  ;;  %v2207_v25 = vsel %vm287_vm6, %v3867_v13, %v2206_v4  ;;  %v2308_v32 = vsel %vm281_vm3, %v2301_v38, %v2307_v50  ;;  %v1327_v53 = vpack.c.bf16 %v3814_v26, %v3814_v26  ;;  %v1646_v24 = vpop.f32.mrf.mxu2 }
 0x166   :  { %v1896_v27 = vsel %vm289_vm7, %v1889_v2, %v1895_v57  ;;  %v2303_v1 = vunpack.c.l.b16 %v1326_v17  ;;  %v2208_v44 = vsel %vm289_vm7, %v2201_v30, %v2207_v25  ;;  %v2309_v19 = vsel %vm283_vm4, %v2302_v51, %v2308_v32 }
 0x167   :  { %v1897_v5 = vpack.c.b16 %v1896_v27, %v1896_v27  ;;  %v1328_v43 = vpack.c.bf16 %v3825_v46, %v3825_v46  ;;  %v2304_v63 = vunpack.c.l.b16 %v1327_v53  ;;  %v2209_v15 = vpack.c.b16 %v2208_v44, %v2208_v44  ;;  %v415_v34 = vpop.xlane.xlu0 %414  ;;  %v744_v46 = vpop.xlane.xlu2 %743  ;;  %v2912_v44 = vld [vmem:[%s4053_s3] ss:$0 sm:$0xff] }
 0x168   :  { %v2310_v6 = vsel %vm285_vm5, %v2303_v1, %v2309_v19  ;;  %v416_v18 = vadd.f32 %v415_v34, %v293_v45 }
 0x169   :  { %1955 = vmatmul.bf16.vlgmr.msrb.gmra.mxu1 %v1897_v5  ;;  %v2305_v13 = vunpack.c.l.b16 %v1328_v43  ;;  %v2311_v0 = vsel %vm287_vm6, %v2304_v63, %v2310_v6 }
 0x16a   :  { %v531_v10 = vadd.f32 %v530_v11, %v416_v18 }
 0x16b   :  { %v2312_v26 = vsel %vm289_vm7, %v2305_v13, %v2311_v0 }
 0x16c   :  { %v2313_v55 = vpack.c.b16 %v2312_v26, %v2312_v26  ;;  %v646_v21 = vadd.f32 %v645_v54, %v531_v10 }
 0x16d   :  { %2267 = vmatmul.bf16.vlgmr.msra.gmra.mxu0 %v2209_v15 }
 0x16e   :  { %v745_v38 = vadd.f32 %v744_v46, %v646_v21 }
 0x16f   :  { %v1541_v20 = vpop.f32.mrf.mxu1  ;;  %v867_v3 = vpop.xlane.xlu2 %866 }
 0x170   :  { %v868_v41 = vadd.f32 %v867_v3, %v745_v38  ;;  %v1542_v60 = vadd.f32 %v1541_v20, %v1455_v8 }
 0x172   :  { %v1648_v39 = vadd.f32 %v1644_v22, %v1542_v60 }
 0x174   :  { %v1752_v40 = vadd.f32 %v1748_v14, %v1648_v39 }
 0x177   :  { %v1543_v28 = vpop.f32.mrf.mxu1 }
 0x179   :  { %2371 = vmatmul.bf16.vlgmr.msra.gmra.mxu1 %v2313_v55  ;;  %v982_v49 = vpop.xlane.xlu0 %981 }
 0x17a   :  { %v983_v36 = vadd.f32 %v982_v49, %v868_v41 }
 0x18e   :  { %v1097_v56 = vpop.xlane.xlu1 %1096 }
 0x18f   :  { %v1098_v23 = vadd.f32 %v1097_v56, %v983_v36 }
 0x1a4   :  { %v1196_v16 = vpop.xlane.xlu2 %1195 }
 0x1a5   :  { %v1197_v61 = vadd.f32 %v1196_v16, %v1098_v23 }
 0x1be   :  { %v1319_v37 = vpop.xlane.xlu0 %1318 }
 0x1bf   :  { %v1320_v12 = vadd.f32 %v1319_v37, %v1197_v61 }
 0x1c1   :  { %v1329_v7 = vadd.f32 1.0, %v1320_v12 }
 0x1c3   :  { %2913 = vrsqrt.f32 %v1329_v7  ;;  %vm1336_vm8 = vweird.f32 %v1329_v7 }
 0x1c9   :  { %v2914_v48 = vpop.eup %2913 }
 0x1ca   :  { %v1331_v35 = vmul.f32 %v2914_v48, %v1329_v7  ;;  %vm1337_vm9 = vweird.f32 %v2914_v48 }
 0x1cb   :  { %vm1338_vm10 = vmor %vm1336_vm8, %vm1337_vm9 }
 0x1cc   :  { %v1332_v47 = vmul.f32 %v2914_v48, %v1331_v35 }
 0x1ce   :  { %v1333_v17 = vmul.f32 0.5, %v1332_v47 }
 0x1d0   :  { %v1334_v51 = vsub.f32 1.5, %v1333_v17 }
 0x1d2   :  { %v1335_v32 = vmul.f32 %v2914_v48, %v1334_v51 }
 0x1d4   :  { %v1339_v19 = vsel %vm1338_vm10, %v2914_v48, %v1335_v32 }
 0x1da   :  { %v1852_v59 = vpop.f32.mrf.mxu0 }
 0x1db   :  { %v1856_v2 = vadd.f32 %v1852_v59, %v1752_v40 }
 0x1dd   :  { %v2060_v62 = vpop.f32.mrf.mxu2 }
 0x1e2   :  { %v1854_v58 = vpop.f32.mrf.mxu0 }
 0x1e5   :  { %v2062_v50 = vpop.f32.mrf.mxu2 }
 0x1e6   :  { %v1956_v42 = vpop.f32.mrf.mxu1 }
 0x1e7   :  { %v2164_v52 = vpop.f32.mrf.mxu3  ;;  %v1960_v31 = vadd.f32 %v1956_v42, %v1856_v2 }
 0x1e9   :  { %v2064_v33 = vadd.f32 %v2060_v62, %v1960_v31 }
 0x1ea   :  { %v2268_v4 = vpop.f32.mrf.mxu0 }
 0x1eb   :  { %v2168_v27 = vadd.f32 %v2164_v52, %v2064_v33 }
 0x1ed   :  { %v2272_v25 = vadd.f32 %v2268_v4, %v2168_v27 }
 0x1ee   :  { %v1958_v30 = vpop.f32.mrf.mxu1 }
 0x1ef   :  { %v2166_v57 = vpop.f32.mrf.mxu3 }
 0x1f2   :  { %v2270_v53 = vpop.f32.mrf.mxu0 }
 0x1f6   :  { %v2372_v5 = vpop.f32.mrf.mxu1 }
 0x1f7   :  { %v2376_v1 = vadd.f32 %v2372_v5, %v2272_v25 }
 0x1f9   :  { %v2377_v43 = vmul.f32 %v2376_v1, %v1339_v19 }
 0x1fb   :  { %v2382_v63 = vadd.f32 %v2912_v44, %v2377_v43 }
 0x1fd   :  { %2383 = vst [vmem:[#allocation9] sm:$0xff] %v2382_v63 }
 0x1fe   :  { %v2374_v15 = vpop.f32.mrf.mxu1  ;;  %2394 = dma.vmem_to_hbm [thread:$0]  %s2390_s0, 128, %s2392_s27, [#allocation8]  }
 0x1ff   :  { %3021 = dma.done.wait [#allocation8], 128  }
 0x200   :  { %3022 = vsyncadd [#allocation8], 4294967168 }
 0x201   :  { %2399 = vsyncpa [#allocation7], 1 }
 0x202   :  { %2400 = vsyncpa [#allocation8], 1 }
 0x203   :  { %2401 = vsyncmov [#allocation3] }
 0x206   :  { %s2402_s3 = vpop.sfrf %2401 }
 0x207   :  { %p2789_p2 = scmp.ne.s32.totalorder %s2402_s3, 0 }
 0x209   :  { %2406 = shalt.err (%p2789_p2)  }
 0x20a   :  { %2408 = vsyncmov [#allocation3 + $0x1] }
 0x20d   :  { %s2409_s28 = vpop.sfrf %2408 }
 0x20e   :  { %p2790_p3 = scmp.ne.s32.totalorder %s2409_s28, 0 }
 0x210   :  { %2413 = shalt.err (%p2790_p3)  }

</bundles_post_ra>
